<compile_context>
chip_gen: v7x
topology: tpu7x:2x2x1
jax: 0.10.0
libtpu: 0.0.40
codegen_flags: <defaults>
</compile_context>

<pallas_src>
import functools

import jax
import jax.numpy as jnp
from jax import lax
from jax.experimental import pallas as pl
from jax.experimental.pallas import tpu as pltpu


def _round_up(x: int, m: int) -> int:
    return ((x + m - 1) // m) * m


def nnlstm_kernel(x_ref, wih_ref, whh_ref, b_ref, wfc_ref, bfc_ref,
                  h0_ref, c0_ref,
                  out_ref, hn_ref, cn_ref,
                  xp_scr,
                  *, t_chunk: int, valid_last: int, o_valid: int, unroll):
    c_idx = pl.program_id(1)                       # time-chunk index ("arbitrary")
    n_c = pl.num_programs(1)
    tc, b_blk, i_pad = x_ref.shape
    h_pad = h0_ref.shape[1]

    # ---- carried state lives in the resident output blocks (index map ignores
    #      the time axis); initialize at the first chunk of this batch block ----
    @pl.when(c_idx == 0)
    def _():
        hn_ref[...] = h0_ref[...]
        cn_ref[...] = c0_ref[...]

    # ---- hoisted input projection for the whole chunk: one big MXU matmul ----
    # x arrives as bf16 straight from HBM; bias folded in here (one broadcast per
    # chunk).  Result stored bf16 in VMEM scratch and indexed per step.
    x_chunk = x_ref[...].reshape(tc * b_blk, i_pad)
    xp = jnp.dot(x_chunk, wih_ref[...], preferred_element_type=jnp.float32)
    xp_scr[...] = (xp + b_ref[...]).reshape(tc, b_blk, 4 * h_pad).astype(jnp.bfloat16)

    whh = whh_ref[...]                             # (Hp, 4Hp), bf16

    # ---- serial recurrence: only h @ w_hh + gate math on the critical path ---
    def step(t, carry):
        h, c = carry
        gates = xp_scr[t].astype(jnp.float32) + jnp.dot(
            h.astype(jnp.bfloat16), whh, preferred_element_type=jnp.float32)
        # gate slices are whole 128-lane blocks (Hp is a multiple of 128)
        i_g = jax.nn.sigmoid(gates[:, 0 * h_pad:1 * h_pad])
        f_g = jax.nn.sigmoid(gates[:, 1 * h_pad:2 * h_pad])
        g_g = jnp.tanh(gates[:, 2 * h_pad:3 * h_pad])
        o_g = jax.nn.sigmoid(gates[:, 3 * h_pad:4 * h_pad])
        c_new = f_g * c + i_g * g_g
        h_new = o_g * jnp.tanh(c_new)
        return h_new, c_new

    def run_steps(n_steps):
        h, c = lax.fori_loop(0, n_steps, step, (hn_ref[...], cn_ref[...]),
                             unroll=unroll)
        hn_ref[...] = h
        cn_ref[...] = c

    # Padded timesteps exist only at the tail of the LAST chunk and are pure
    # pass-through, so instead of masking every step we simply run fewer
    # (statically known) steps there.  No blend anywhere on the hot path.
    if valid_last == t_chunk:
        run_steps(t_chunk)
    else:
        @pl.when(c_idx < n_c - 1)
        def _():
            run_steps(t_chunk)

        @pl.when(c_idx == n_c - 1)
        def _():
            run_steps(valid_last)

    # ---- last chunk: FC + masked log_softmax on the final hidden state -------
    @pl.when(c_idx == n_c - 1)
    def _():
        h = hn_ref[...]
        logits = (jnp.dot(h.astype(jnp.bfloat16), wfc_ref[...],
                          preferred_element_type=jnp.float32) + bfc_ref[...])
        # mask padded output lanes so log_softmax only normalizes valid classes
        col = lax.broadcasted_iota(jnp.int32, logits.shape, 1)
        logits = jnp.where(col < o_valid, logits, -1e30)
        m = jnp.max(logits, axis=-1, keepdims=True)
        lse = jnp.log(jnp.sum(jnp.exp(logits - m), axis=-1, keepdims=True)) + m
        out_ref[...] = logits - lse


def nnlstm_forward(x_btf, hidden, params, *, t_chunk=32, unroll=4):
    """x_btf: (B, T, I) float32, batch_first like PyTorch.
    hidden: (h0, c0) each (1, B, H).  Returns (log_probs, (h_n, c_n))."""
    h0, c0 = hidden
    B, T, I = x_btf.shape
    H = h0.shape[-1]
    O = params["w_fc"].shape[0]

    LANE, SUB = 128, 8
    # Batch block policy:
    #   * B < 16  -> single block (pad B to sublane multiple).
    #   * B >= 16 -> at least two blocks so v7x's second TensorCore gets a
    #     "parallel" batch block; cap block M at 256 for the 256-wide MXU.
    Bp8 = _round_up(B, SUB)
    if B >= 16:
        b_blk = min(256, _round_up((Bp8 + 1) // 2, SUB))
    else:
        b_blk = Bp8
    Bp = _round_up(Bp8, b_blk)
    Ip = _round_up(I, LANE)
    Hp = _round_up(H, LANE)
    Op = _round_up(O, LANE)
    Tc = max(1, min(t_chunk, T))
    Tp = _round_up(T, Tc)
    n_b = Bp // b_blk
    n_c = Tp // Tc
    valid_last = T - (n_c - 1) * Tc        # valid steps in the last time chunk

    f32, bf16 = jnp.float32, jnp.bfloat16

    # --- pad + time-major x, streamed as bf16 (halves HBM traffic / VMEM) -----
    x_tbi = jnp.transpose(x_btf, (1, 0, 2)).astype(bf16)           # (T, B, I)
    x_p = jnp.zeros((Tp, Bp, Ip), bf16).at[:T, :B, :I].set(x_tbi)

    # --- LSTM weights: transpose + gate-block-aligned padding (order i,f,g,o) -
    w_ih_src = params["w_ih"].astype(f32)                          # (4H, I)
    w_hh_src = params["w_hh"].astype(f32)                          # (4H, H)
    b_src = (params["b_ih"] + params["b_hh"]).astype(f32)          # (4H,)
    w_ih_p = jnp.zeros((Ip, 4 * Hp), f32)
    w_hh_p = jnp.zeros((Hp, 4 * Hp), f32)
    b_p = jnp.zeros((1, 4 * Hp), f32)
    for g in range(4):
        w_ih_p = w_ih_p.at[:I, g * Hp:g * Hp + H].set(w_ih_src[g * H:(g + 1) * H, :].T)
        w_hh_p = w_hh_p.at[:H, g * Hp:g * Hp + H].set(w_hh_src[g * H:(g + 1) * H, :].T)
        b_p = b_p.at[0, g * Hp:g * Hp + H].set(b_src[g * H:(g + 1) * H])

    w_fc_p = jnp.zeros((Hp, Op), f32).at[:H, :O].set(params["w_fc"].astype(f32).T)
    b_fc_p = jnp.zeros((1, Op), f32).at[0, :O].set(params["b_fc"].astype(f32))

    h0_p = jnp.zeros((Bp, Hp), f32).at[:B, :H].set(h0.reshape(B, H).astype(f32))
    c0_p = jnp.zeros((Bp, Hp), f32).at[:B, :H].set(c0.reshape(B, H).astype(f32))

    # --- explicit scoped-VMEM budget sized from the actual tile footprint -----
    # (inputs/outputs are double-buffered by the auto-pipeline; xp_scr is bf16)
    vmem_est = (
        2 * Tc * b_blk * Ip * 2          # x chunk (bf16)
        + 2 * Ip * 4 * Hp * 2            # w_ih (bf16)
        + 2 * Hp * 4 * Hp * 2            # w_hh (bf16)
        + 2 * 4 * Hp * 4                 # bias (f32)
        + 2 * Hp * Op * 2                # w_fc (bf16)
        + 2 * Op * 4                     # b_fc (f32)
        + 2 * 2 * b_blk * Hp * 4         # h0, c0 (f32)
        + 2 * (b_blk * Op * 4 + 2 * b_blk * Hp * 4)   # outputs (f32)
        + Tc * b_blk * 4 * Hp * 2        # xp_scr (bf16)
    )
    vmem_limit = int(min(96 * 2**20, max(32 * 2**20, int(vmem_est * 1.5))))
    # TODO(synk): on v7x, pipeline_mode=pl.Buffered(1) on the constant-index
    # weight BlockSpecs would drop the redundant second weight buffer when H/I
    # are large; left off here to keep the kernel conservative across chips.

    kernel = functools.partial(nnlstm_kernel, t_chunk=Tc, valid_last=valid_last,
                               o_valid=O, unroll=unroll)

    grid_spec = pltpu.PrefetchScalarGridSpec(
        num_scalar_prefetch=0,
        grid=(n_b, n_c),
        in_specs=[
            pl.BlockSpec((Tc, b_blk, Ip), lambda b, c: (c, b, 0)),   # x chunk (bf16)
            pl.BlockSpec((Ip, 4 * Hp), lambda b, c: (0, 0)),          # w_ih
            pl.BlockSpec((Hp, 4 * Hp), lambda b, c: (0, 0)),          # w_hh
            pl.BlockSpec((1, 4 * Hp), lambda b, c: (0, 0)),           # bias
            pl.BlockSpec((Hp, Op), lambda b, c: (0, 0)),              # w_fc
            pl.BlockSpec((1, Op), lambda b, c: (0, 0)),               # b_fc
            pl.BlockSpec((b_blk, Hp), lambda b, c: (b, 0)),           # h0
            pl.BlockSpec((b_blk, Hp), lambda b, c: (b, 0)),           # c0
        ],
        out_specs=(
            pl.BlockSpec((b_blk, Op), lambda b, c: (b, 0)),           # log_probs
            pl.BlockSpec((b_blk, Hp), lambda b, c: (b, 0)),           # h_n (carry)
            pl.BlockSpec((b_blk, Hp), lambda b, c: (b, 0)),           # c_n (carry)
        ),
        scratch_shapes=[
            pltpu.VMEM((Tc, b_blk, 4 * Hp), bf16),     # chunk input projection
        ],
    )

    out_shapes = (
        jax.ShapeDtypeStruct((Bp, Op), f32),
        jax.ShapeDtypeStruct((Bp, Hp), f32),
        jax.ShapeDtypeStruct((Bp, Hp), f32),
    )

    log_probs_p, h_n_p, c_n_p = pl.pallas_call(
        kernel,
        out_shape=out_shapes,
        grid_spec=grid_spec,
        compiler_params=pltpu.CompilerParams(
            # batch blocks are independent (v7x 2 TCs); time chunks carry state.
            dimension_semantics=("parallel", "arbitrary"),
            vmem_limit_bytes=vmem_limit),
    )(x_p, w_ih_p.astype(bf16), w_hh_p.astype(bf16), b_p,
      w_fc_p.astype(bf16), b_fc_p, h0_p, c0_p)

    log_probs = log_probs_p[:B, :O]
    h_n = h_n_p[:B, :H].reshape(1, B, H)
    c_n = c_n_p[:B, :H].reshape(1, B, H)
    return log_probs, (h_n, c_n)


def nnlstm_reference(x_btf, hidden, params):
    """Pure-JAX f32 reference matching the PyTorch module."""
    h0, c0 = hidden
    B, T, _ = x_btf.shape
    H = h0.shape[-1]
    b = params["b_ih"] + params["b_hh"]
    h = h0.reshape(B, H)
    c = c0.reshape(B, H)
    for t in range(T):
        gates = x_btf[:, t, :] @ params["w_ih"].T + h @ params["w_hh"].T + b
        i_g = jax.nn.sigmoid(gates[:, 0 * H:1 * H])
        f_g = jax.nn.sigmoid(gates[:, 1 * H:2 * H])
        g_g = jnp.tanh(gates[:, 2 * H:3 * H])
        o_g = jax.nn.sigmoid(gates[:, 3 * H:4 * H])
        c = f_g * c + i_g * g_g
        h = o_g * jnp.tanh(c)
    logits = h @ params["w_fc"].T + params["b_fc"]
    return jax.nn.log_softmax(logits, axis=-1), (h.reshape(1, B, H), c.reshape(1, B, H))


def init_params(key, input_size, hidden_size, output_size):
    """Deterministic init mimicking PyTorch's uniform(-1/sqrt(H), 1/sqrt(H))."""
    ks = jax.random.split(key, 6)
    k_lstm = 1.0 / jnp.sqrt(hidden_size)
    k_fc = 1.0 / jnp.sqrt(hidden_size)
    u = lambda k, shape, s: jax.random.uniform(k, shape, jnp.float32, -s, s)
    return {
        "w_ih": u(ks[0], (4 * hidden_size, input_size), k_lstm),
        "w_hh": u(ks[1], (4 * hidden_size, hidden_size), k_lstm),
        "b_ih": u(ks[2], (4 * hidden_size,), k_lstm),
        "b_hh": u(ks[3], (4 * hidden_size,), k_lstm),
        "w_fc": u(ks[4], (output_size, hidden_size), k_fc),
        "b_fc": u(ks[5], (output_size,), k_fc),
    }


if __name__ == "__main__":
    B, T, I, H, O = 2, 8, 16, 32, 16

    key = jax.random.PRNGKey(0)
    k_param, k_x = jax.random.split(key)
    params = init_params(k_param, I, H, O)

    x = jax.random.normal(k_x, (B, T, I), jnp.float32)
    h0 = jnp.zeros((1, B, H), jnp.float32)   # init_hidden()
    c0 = jnp.zeros((1, B, H), jnp.float32)

    # pure-JAX f32 reference
    ref_lp, (ref_h, ref_c) = nnlstm_reference(x, (h0, c0), params)

    # t_chunk=4 : 2 full chunks (streamed / carried-state path)
    # t_chunk=3 : 3 chunks, ragged last chunk (valid_last < Tc path)
    # t_chunk=32: single chunk (whole sequence in one grid step)
    for tc in (4, 3, 32):
        log_probs, (h_n, c_n) = nnlstm_forward(x, (h0, c0), params, t_chunk=tc)
        jax.block_until_ready((log_probs, h_n, c_n))

        assert log_probs.shape == (B, O)
        assert h_n.shape == (1, B, H) and c_n.shape == (1, B, H)

        # bf16 MXU operands + bf16 xp_scr -> loose tolerance vs f32 reference
        assert jnp.allclose(log_probs, ref_lp, atol=1e-1, rtol=1e-1)
        assert jnp.allclose(h_n, ref_h, atol=1e-1, rtol=1e-1)
        assert jnp.allclose(c_n, ref_c, atol=1e-1, rtol=1e-1)

    print("KERNEL_OK")
</pallas_src>

<mosaic_0001>
module attributes {stable_mosaic.version = 11 : i64} {
  func.func @nnlstm_kernel(%arg0: i32, %arg1: i32, %arg2: memref<4x8x128xbf16, #tpu.memory_space<vmem>>, %arg3: memref<128x512xbf16, #tpu.memory_space<vmem>>, %arg4: memref<128x512xbf16, #tpu.memory_space<vmem>>, %arg5: memref<1x512xf32, #tpu.memory_space<vmem>>, %arg6: memref<128x128xbf16, #tpu.memory_space<vmem>>, %arg7: memref<1x128xf32, #tpu.memory_space<vmem>>, %arg8: memref<8x128xf32, #tpu.memory_space<vmem>>, %arg9: memref<8x128xf32, #tpu.memory_space<vmem>>, %arg10: memref<8x128xf32, #tpu.memory_space<vmem>>, %arg11: memref<8x128xf32, #tpu.memory_space<vmem>>, %arg12: memref<8x128xf32, #tpu.memory_space<vmem>>, %arg13: memref<4x8x512xbf16, #tpu.memory_space<vmem>>) attributes {dimension_semantics = [#tpu.dimension_semantics<parallel>, #tpu.dimension_semantics<arbitrary>], iteration_bounds = array<i64: 1, 2>, scalar_prefetch = 0 : i64, scratch_operands = 1 : i64, tpu.core_type = #tpu.core_type<tc>, window_params = [{transform_indices = @transform_0, window_bounds = array<i64: 4, 8, 128>}, {pipeline_mode = #tpu.pipeline_mode<synchronous>, transform_indices = @transform_1, window_bounds = array<i64: 128, 512>}, {pipeline_mode = #tpu.pipeline_mode<synchronous>, transform_indices = @transform_2, window_bounds = array<i64: 128, 512>}, {pipeline_mode = #tpu.pipeline_mode<synchronous>, transform_indices = @transform_3, window_bounds = array<i64: 1, 512>}, {pipeline_mode = #tpu.pipeline_mode<synchronous>, transform_indices = @transform_4, window_bounds = array<i64: 128, 128>}, {pipeline_mode = #tpu.pipeline_mode<synchronous>, transform_indices = @transform_5, window_bounds = array<i64: 1, 128>}, {transform_indices = @transform_6, window_bounds = array<i64: 8, 128>}, {transform_indices = @transform_7, window_bounds = array<i64: 8, 128>}, {transform_indices = @transform_8, window_bounds = array<i64: 8, 128>}, {transform_indices = @transform_9, window_bounds = array<i64: 8, 128>}, {transform_indices = @transform_10, window_bounds = array<i64: 8, 128>}]} {
    %c0_i32 = arith.constant 0 : i32
    %0 = arith.cmpi eq, %arg1, %c0_i32 : i32
    %1 = arith.extui %0 : i1 to i32
    %c0_i32_0 = arith.constant 0 : i32
    %2 = arith.cmpi ne, %1, %c0_i32_0 : i32
    scf.if %2 {
      %c0_47 = arith.constant 0 : index
      %c0_48 = arith.constant 0 : index
      %149 = vector.load %arg8[%c0_47, %c0_48] : memref<8x128xf32, #tpu.memory_space<vmem>>, vector<8x128xf32>
      %c0_49 = arith.constant 0 : index
      %c0_50 = arith.constant 0 : index
      %150 = vector.load %arg11[%c0_49, %c0_50] : memref<8x128xf32, #tpu.memory_space<vmem>>, vector<8x128xf32>
      tpu.vector_store %arg11[%c0_49, %c0_50], %149 {strides = array<i32>} : memref<8x128xf32, #tpu.memory_space<vmem>>, vector<8x128xf32>,
      %c0_51 = arith.constant 0 : index
      %c0_52 = arith.constant 0 : index
      %151 = vector.load %arg9[%c0_51, %c0_52] : memref<8x128xf32, #tpu.memory_space<vmem>>, vector<8x128xf32>
      %c0_53 = arith.constant 0 : index
      %c0_54 = arith.constant 0 : index
      %152 = vector.load %arg12[%c0_53, %c0_54] : memref<8x128xf32, #tpu.memory_space<vmem>>, vector<8x128xf32>
      tpu.vector_store %arg12[%c0_53, %c0_54], %151 {strides = array<i32>} : memref<8x128xf32, #tpu.memory_space<vmem>>, vector<8x128xf32>,
    } else {
    }
    %c0 = arith.constant 0 : index
    %c0_1 = arith.constant 0 : index
    %c0_2 = arith.constant 0 : index
    %3 = vector.load %arg2[%c0, %c0_1, %c0_2] : memref<4x8x128xbf16, #tpu.memory_space<vmem>>, vector<4x8x128xbf16>
    %4 = vector.shape_cast %3 : vector<4x8x128xbf16> to vector<32x128xbf16>
    %c0_3 = arith.constant 0 : index
    %c0_4 = arith.constant 0 : index
    %5 = vector.load %arg3[%c0_3, %c0_4] : memref<128x512xbf16, #tpu.memory_space<vmem>>, vector<128x512xbf16>
    %cst = arith.constant dense<0.000000e+00> : vector<32x512xf32>
    %6 = tpu.matmul %4, %5, %cst {dimension_numbers = #tpu.dot_dimension_numbers<[1], [0], [0], [1], [0, 0, 1, 1], [], []>} : vector<32x128xbf16>, vector<128x512xbf16>, vector<32x512xf32> -> vector<32x512xf32>
    %c0_5 = arith.constant 0 : index
    %c0_6 = arith.constant 0 : index
    %7 = vector.load %arg5[%c0_5, %c0_6] : memref<1x512xf32, #tpu.memory_space<vmem>>, vector<1x512xf32>
    %8 = vector.broadcast %7 : vector<1x512xf32> to vector<32x512xf32>
    %9 = arith.addf %6, %8 : vector<32x512xf32>
    %10 = vector.shape_cast %9 : vector<32x512xf32> to vector<4x8x512xf32>
    %11 = arith.truncf %10 : vector<4x8x512xf32> to vector<4x8x512xbf16>
    %c0_7 = arith.constant 0 : index
    %c0_8 = arith.constant 0 : index
    %c0_9 = arith.constant 0 : index
    %12 = vector.load %arg13[%c0_7, %c0_8, %c0_9] : memref<4x8x512xbf16, #tpu.memory_space<vmem>>, vector<4x8x512xbf16>
    tpu.vector_store %arg13[%c0_7, %c0_8, %c0_9], %11 {strides = array<i32>} : memref<4x8x512xbf16, #tpu.memory_space<vmem>>, vector<4x8x512xbf16>,
    %c0_10 = arith.constant 0 : index
    %c0_11 = arith.constant 0 : index
    %13 = vector.load %arg4[%c0_10, %c0_11] : memref<128x512xbf16, #tpu.memory_space<vmem>>, vector<128x512xbf16>
    %c0_12 = arith.constant 0 : index
    %c0_13 = arith.constant 0 : index
    %14 = vector.load %arg11[%c0_12, %c0_13] : memref<8x128xf32, #tpu.memory_space<vmem>>, vector<8x128xf32>
    %c0_14 = arith.constant 0 : index
    %c0_15 = arith.constant 0 : index
    %15 = vector.load %arg12[%c0_14, %c0_15] : memref<8x128xf32, #tpu.memory_space<vmem>>, vector<8x128xf32>
    %c0_i32_16 = arith.constant 0 : i32
    %16 = arith.index_cast %c0_i32_16 : i32 to index
    %c0_17 = arith.constant 0 : index
    %c0_18 = arith.constant 0 : index
    %17 = vector.load %arg13[%16, %c0_17, %c0_18] : memref<4x8x512xbf16, #tpu.memory_space<vmem>>, vector<1x8x512xbf16>
    %18 = vector.shape_cast %17 : vector<1x8x512xbf16> to vector<8x512xbf16>
    %19 = arith.extf %18 : vector<8x512xbf16> to vector<8x512xf32>
    %20 = arith.truncf %14 : vector<8x128xf32> to vector<8x128xbf16>
    %cst_19 = arith.constant dense<0.000000e+00> : vector<8x512xf32>
    %21 = tpu.matmul %20, %13, %cst_19 {dimension_numbers = #tpu.dot_dimension_numbers<[1], [0], [0], [1], [0, 0, 1, 1], [], []>} : vector<8x128xbf16>, vector<128x512xbf16>, vector<8x512xf32> -> vector<8x512xf32>
    %22 = arith.addf %19, %21 : vector<8x512xf32>
    %23 = vector.extract_strided_slice %22 {offsets = [0, 0], sizes = [8, 128], strides = [1, 1]} : vector<8x512xf32> to vector<8x128xf32>
    %24 = arith.negf %23 : vector<8x128xf32>
    %25 = math.exp %24 : vector<8x128xf32>
    %cst_20 = arith.constant 1.000000e+00 : f32
    %26 = vector.broadcast %cst_20 : f32 to vector<8x128xf32>
    %27 = arith.addf %26, %25 : vector<8x128xf32>
    %28 = arith.divf %26, %27 : vector<8x128xf32>
    %29 = vector.extract_strided_slice %22 {offsets = [0, 128], sizes = [8, 128], strides = [1, 1]} : vector<8x512xf32> to vector<8x128xf32>
    %30 = arith.negf %29 : vector<8x128xf32>
    %31 = math.exp %30 : vector<8x128xf32>
    %cst_21 = arith.constant 1.000000e+00 : f32
    %32 = vector.broadcast %cst_21 : f32 to vector<8x128xf32>
    %33 = arith.addf %32, %31 : vector<8x128xf32>
    %34 = arith.divf %32, %33 : vector<8x128xf32>
    %35 = vector.extract_strided_slice %22 {offsets = [0, 256], sizes = [8, 128], strides = [1, 1]} : vector<8x512xf32> to vector<8x128xf32>
    %36 = math.tanh %35 : vector<8x128xf32>
    %37 = vector.extract_strided_slice %22 {offsets = [0, 384], sizes = [8, 128], strides = [1, 1]} : vector<8x512xf32> to vector<8x128xf32>
    %38 = arith.negf %37 : vector<8x128xf32>
    %39 = math.exp %38 : vector<8x128xf32>
    %cst_22 = arith.constant 1.000000e+00 : f32
    %40 = vector.broadcast %cst_22 : f32 to vector<8x128xf32>
    %41 = arith.addf %40, %39 : vector<8x128xf32>
    %42 = arith.divf %40, %41 : vector<8x128xf32>
    %43 = arith.mulf %34, %15 : vector<8x128xf32>
    %44 = arith.mulf %28, %36 : vector<8x128xf32>
    %45 = arith.addf %43, %44 : vector<8x128xf32>
    %46 = math.tanh %45 : vector<8x128xf32>
    %47 = arith.mulf %42, %46 : vector<8x128xf32>
    %c1_i32 = arith.constant 1 : i32
    %48 = arith.index_cast %c1_i32 : i32 to index
    %c0_23 = arith.constant 0 : index
    %c0_24 = arith.constant 0 : index
    %49 = vector.load %arg13[%48, %c0_23, %c0_24] : memref<4x8x512xbf16, #tpu.memory_space<vmem>>, vector<1x8x512xbf16>
    %50 = vector.shape_cast %49 : vector<1x8x512xbf16> to vector<8x512xbf16>
    %51 = arith.extf %50 : vector<8x512xbf16> to vector<8x512xf32>
    %52 = arith.truncf %47 : vector<8x128xf32> to vector<8x128xbf16>
    %cst_25 = arith.constant dense<0.000000e+00> : vector<8x512xf32>
    %53 = tpu.matmul %52, %13, %cst_25 {dimension_numbers = #tpu.dot_dimension_numbers<[1], [0], [0], [1], [0, 0, 1, 1], [], []>} : vector<8x128xbf16>, vector<128x512xbf16>, vector<8x512xf32> -> vector<8x512xf32>
    %54 = arith.addf %51, %53 : vector<8x512xf32>
    %55 = vector.extract_strided_slice %54 {offsets = [0, 0], sizes = [8, 128], strides = [1, 1]} : vector<8x512xf32> to vector<8x128xf32>
    %56 = arith.negf %55 : vector<8x128xf32>
    %57 = math.exp %56 : vector<8x128xf32>
    %cst_26 = arith.constant 1.000000e+00 : f32
    %58 = vector.broadcast %cst_26 : f32 to vector<8x128xf32>
    %59 = arith.addf %58, %57 : vector<8x128xf32>
    %60 = arith.divf %58, %59 : vector<8x128xf32>
    %61 = vector.extract_strided_slice %54 {offsets = [0, 128], sizes = [8, 128], strides = [1, 1]} : vector<8x512xf32> to vector<8x128xf32>
    %62 = arith.negf %61 : vector<8x128xf32>
    %63 = math.exp %62 : vector<8x128xf32>
    %cst_27 = arith.constant 1.000000e+00 : f32
    %64 = vector.broadcast %cst_27 : f32 to vector<8x128xf32>
    %65 = arith.addf %64, %63 : vector<8x128xf32>
    %66 = arith.divf %64, %65 : vector<8x128xf32>
    %67 = vector.extract_strided_slice %54 {offsets = [0, 256], sizes = [8, 128], strides = [1, 1]} : vector<8x512xf32> to vector<8x128xf32>
    %68 = math.tanh %67 : vector<8x128xf32>
    %69 = vector.extract_strided_slice %54 {offsets = [0, 384], sizes = [8, 128], strides = [1, 1]} : vector<8x512xf32> to vector<8x128xf32>
    %70 = arith.negf %69 : vector<8x128xf32>
    %71 = math.exp %70 : vector<8x128xf32>
    %cst_28 = arith.constant 1.000000e+00 : f32
    %72 = vector.broadcast %cst_28 : f32 to vector<8x128xf32>
    %73 = arith.addf %72, %71 : vector<8x128xf32>
    %74 = arith.divf %72, %73 : vector<8x128xf32>
    %75 = arith.mulf %66, %45 : vector<8x128xf32>
    %76 = arith.mulf %60, %68 : vector<8x128xf32>
    %77 = arith.addf %75, %76 : vector<8x128xf32>
    %78 = math.tanh %77 : vector<8x128xf32>
    %79 = arith.mulf %74, %78 : vector<8x128xf32>
    %c2_i32 = arith.constant 2 : i32
    %80 = arith.index_cast %c2_i32 : i32 to index
    %c0_29 = arith.constant 0 : index
    %c0_30 = arith.constant 0 : index
    %81 = vector.load %arg13[%80, %c0_29, %c0_30] : memref<4x8x512xbf16, #tpu.memory_space<vmem>>, vector<1x8x512xbf16>
    %82 = vector.shape_cast %81 : vector<1x8x512xbf16> to vector<8x512xbf16>
    %83 = arith.extf %82 : vector<8x512xbf16> to vector<8x512xf32>
    %84 = arith.truncf %79 : vector<8x128xf32> to vector<8x128xbf16>
    %cst_31 = arith.constant dense<0.000000e+00> : vector<8x512xf32>
    %85 = tpu.matmul %84, %13, %cst_31 {dimension_numbers = #tpu.dot_dimension_numbers<[1], [0], [0], [1], [0, 0, 1, 1], [], []>} : vector<8x128xbf16>, vector<128x512xbf16>, vector<8x512xf32> -> vector<8x512xf32>
    %86 = arith.addf %83, %85 : vector<8x512xf32>
    %87 = vector.extract_strided_slice %86 {offsets = [0, 0], sizes = [8, 128], strides = [1, 1]} : vector<8x512xf32> to vector<8x128xf32>
    %88 = arith.negf %87 : vector<8x128xf32>
    %89 = math.exp %88 : vector<8x128xf32>
    %cst_32 = arith.constant 1.000000e+00 : f32
    %90 = vector.broadcast %cst_32 : f32 to vector<8x128xf32>
    %91 = arith.addf %90, %89 : vector<8x128xf32>
    %92 = arith.divf %90, %91 : vector<8x128xf32>
    %93 = vector.extract_strided_slice %86 {offsets = [0, 128], sizes = [8, 128], strides = [1, 1]} : vector<8x512xf32> to vector<8x128xf32>
    %94 = arith.negf %93 : vector<8x128xf32>
    %95 = math.exp %94 : vector<8x128xf32>
    %cst_33 = arith.constant 1.000000e+00 : f32
    %96 = vector.broadcast %cst_33 : f32 to vector<8x128xf32>
    %97 = arith.addf %96, %95 : vector<8x128xf32>
    %98 = arith.divf %96, %97 : vector<8x128xf32>
    %99 = vector.extract_strided_slice %86 {offsets = [0, 256], sizes = [8, 128], strides = [1, 1]} : vector<8x512xf32> to vector<8x128xf32>
    %100 = math.tanh %99 : vector<8x128xf32>
    %101 = vector.extract_strided_slice %86 {offsets = [0, 384], sizes = [8, 128], strides = [1, 1]} : vector<8x512xf32> to vector<8x128xf32>
    %102 = arith.negf %101 : vector<8x128xf32>
    %103 = math.exp %102 : vector<8x128xf32>
    %cst_34 = arith.constant 1.000000e+00 : f32
    %104 = vector.broadcast %cst_34 : f32 to vector<8x128xf32>
    %105 = arith.addf %104, %103 : vector<8x128xf32>
    %106 = arith.divf %104, %105 : vector<8x128xf32>
    %107 = arith.mulf %98, %77 : vector<8x128xf32>
    %108 = arith.mulf %92, %100 : vector<8x128xf32>
    %109 = arith.addf %107, %108 : vector<8x128xf32>
    %110 = math.tanh %109 : vector<8x128xf32>
    %111 = arith.mulf %106, %110 : vector<8x128xf32>
    %c3_i32 = arith.constant 3 : i32
    %112 = arith.index_cast %c3_i32 : i32 to index
    %c0_35 = arith.constant 0 : index
    %c0_36 = arith.constant 0 : index
    %113 = vector.load %arg13[%112, %c0_35, %c0_36] : memref<4x8x512xbf16, #tpu.memory_space<vmem>>, vector<1x8x512xbf16>
    %114 = vector.shape_cast %113 : vector<1x8x512xbf16> to vector<8x512xbf16>
    %115 = arith.extf %114 : vector<8x512xbf16> to vector<8x512xf32>
    %116 = arith.truncf %111 : vector<8x128xf32> to vector<8x128xbf16>
    %cst_37 = arith.constant dense<0.000000e+00> : vector<8x512xf32>
    %117 = tpu.matmul %116, %13, %cst_37 {dimension_numbers = #tpu.dot_dimension_numbers<[1], [0], [0], [1], [0, 0, 1, 1], [], []>} : vector<8x128xbf16>, vector<128x512xbf16>, vector<8x512xf32> -> vector<8x512xf32>
    %118 = arith.addf %115, %117 : vector<8x512xf32>
    %119 = vector.extract_strided_slice %118 {offsets = [0, 0], sizes = [8, 128], strides = [1, 1]} : vector<8x512xf32> to vector<8x128xf32>
    %120 = arith.negf %119 : vector<8x128xf32>
    %121 = math.exp %120 : vector<8x128xf32>
    %cst_38 = arith.constant 1.000000e+00 : f32
    %122 = vector.broadcast %cst_38 : f32 to vector<8x128xf32>
    %123 = arith.addf %122, %121 : vector<8x128xf32>
    %124 = arith.divf %122, %123 : vector<8x128xf32>
    %125 = vector.extract_strided_slice %118 {offsets = [0, 128], sizes = [8, 128], strides = [1, 1]} : vector<8x512xf32> to vector<8x128xf32>
    %126 = arith.negf %125 : vector<8x128xf32>
    %127 = math.exp %126 : vector<8x128xf32>
    %cst_39 = arith.constant 1.000000e+00 : f32
    %128 = vector.broadcast %cst_39 : f32 to vector<8x128xf32>
    %129 = arith.addf %128, %127 : vector<8x128xf32>
    %130 = arith.divf %128, %129 : vector<8x128xf32>
    %131 = vector.extract_strided_slice %118 {offsets = [0, 256], sizes = [8, 128], strides = [1, 1]} : vector<8x512xf32> to vector<8x128xf32>
    %132 = math.tanh %131 : vector<8x128xf32>
    %133 = vector.extract_strided_slice %118 {offsets = [0, 384], sizes = [8, 128], strides = [1, 1]} : vector<8x512xf32> to vector<8x128xf32>
    %134 = arith.negf %133 : vector<8x128xf32>
    %135 = math.exp %134 : vector<8x128xf32>
    %cst_40 = arith.constant 1.000000e+00 : f32
    %136 = vector.broadcast %cst_40 : f32 to vector<8x128xf32>
    %137 = arith.addf %136, %135 : vector<8x128xf32>
    %138 = arith.divf %136, %137 : vector<8x128xf32>
    %139 = arith.mulf %130, %109 : vector<8x128xf32>
    %140 = arith.mulf %124, %132 : vector<8x128xf32>
    %141 = arith.addf %139, %140 : vector<8x128xf32>
    %142 = math.tanh %141 : vector<8x128xf32>
    %143 = arith.mulf %138, %142 : vector<8x128xf32>
    %c4_i32 = arith.constant 4 : i32
    %c0_41 = arith.constant 0 : index
    %c0_42 = arith.constant 0 : index
    %144 = vector.load %arg11[%c0_41, %c0_42] : memref<8x128xf32, #tpu.memory_space<vmem>>, vector<8x128xf32>
    tpu.vector_store %arg11[%c0_41, %c0_42], %143 {strides = array<i32>} : memref<8x128xf32, #tpu.memory_space<vmem>>, vector<8x128xf32>,
    %c0_43 = arith.constant 0 : index
    %c0_44 = arith.constant 0 : index
    %145 = vector.load %arg12[%c0_43, %c0_44] : memref<8x128xf32, #tpu.memory_space<vmem>>, vector<8x128xf32>
    tpu.vector_store %arg12[%c0_43, %c0_44], %141 {strides = array<i32>} : memref<8x128xf32, #tpu.memory_space<vmem>>, vector<8x128xf32>,
    %c1_i32_45 = arith.constant 1 : i32
    %146 = arith.cmpi eq, %arg1, %c1_i32_45 : i32
    %147 = arith.extui %146 : i1 to i32
    %c0_i32_46 = arith.constant 0 : i32
    %148 = arith.cmpi ne, %147, %c0_i32_46 : i32
    scf.if %148 {
      %c0_47 = arith.constant 0 : index
      %c0_48 = arith.constant 0 : index
      %149 = vector.load %arg11[%c0_47, %c0_48] : memref<8x128xf32, #tpu.memory_space<vmem>>, vector<8x128xf32>
      %150 = arith.truncf %149 : vector<8x128xf32> to vector<8x128xbf16>
      %c0_49 = arith.constant 0 : index
      %c0_50 = arith.constant 0 : index
      %151 = vector.load %arg6[%c0_49, %c0_50] : memref<128x128xbf16, #tpu.memory_space<vmem>>, vector<128x128xbf16>
      %cst_51 = arith.constant dense<0.000000e+00> : vector<8x128xf32>
      %152 = tpu.matmul %150, %151, %cst_51 {dimension_numbers = #tpu.dot_dimension_numbers<[1], [0], [0], [1], [0, 0, 1, 1], [], []>} : vector<8x128xbf16>, vector<128x128xbf16>, vector<8x128xf32> -> vector<8x128xf32>
      %c0_52 = arith.constant 0 : index
      %c0_53 = arith.constant 0 : index
      %153 = vector.load %arg7[%c0_52, %c0_53] : memref<1x128xf32, #tpu.memory_space<vmem>>, vector<1x128xf32>
      %154 = vector.broadcast %153 : vector<1x128xf32> to vector<8x128xf32>
      %155 = arith.addf %152, %154 : vector<8x128xf32>
      %156 = tpu.iota {dimensions = array<i32: 1>} : vector<8x128xi32>
      %c16_i32 = arith.constant 16 : i32
      %157 = vector.broadcast %c16_i32 : i32 to vector<8x128xi32>
      %158 = arith.cmpi slt, %156, %157 : vector<8x128xi32>
      %cst_54 = arith.constant -1.000000e+30 : f32
      %159 = vector.broadcast %cst_54 : f32 to vector<8x128xf32>
      %160 = arith.select %158, %155, %159 : vector<8x128xi1>, vector<8x128xf32>
      %cst_55 = arith.constant dense<0xFF800000> : vector<8xf32>
      %161 = vector.multi_reduction <maximumf>, %160, %cst_55 [1] : vector<8x128xf32> to vector<8xf32>
      %162 = vector.shape_cast %161 : vector<8xf32> to vector<8x1xf32>
      %163 = vector.broadcast %162 : vector<8x1xf32> to vector<8x128xf32>
      %164 = arith.subf %160, %163 : vector<8x128xf32>
      %165 = math.exp %164 : vector<8x128xf32>
      %cst_56 = arith.constant dense<0.000000e+00> : vector<8xf32>
      %166 = vector.multi_reduction <add>, %165, %cst_56 [1] : vector<8x128xf32> to vector<8xf32>
      %167 = vector.shape_cast %166 : vector<8xf32> to vector<8x1xf32>
      %168 = math.log %167 : vector<8x1xf32>
      %169 = arith.addf %168, %162 : vector<8x1xf32>
      %170 = vector.broadcast %169 : vector<8x1xf32> to vector<8x128xf32>
      %171 = arith.subf %160, %170 : vector<8x128xf32>
      %c0_57 = arith.constant 0 : index
      %c0_58 = arith.constant 0 : index
      %172 = vector.load %arg10[%c0_57, %c0_58] : memref<8x128xf32, #tpu.memory_space<vmem>>, vector<8x128xf32>
      tpu.vector_store %arg10[%c0_57, %c0_58], %171 {strides = array<i32>} : memref<8x128xf32, #tpu.memory_space<vmem>>, vector<8x128xf32>,
    } else {
    }
    return
  }
  func.func @transform_0(%arg0: i32, %arg1: i32) -> (i32, i32, i32) {
    %c0_i32 = arith.constant 0 : i32
    %c0_i32_0 = arith.constant 0 : i32
    return %arg1, %arg0, %c0_i32 : i32, i32, i32
  }
  func.func @transform_1(%arg0: i32, %arg1: i32) -> (i32, i32) {
    %c0_i32 = arith.constant 0 : i32
    %c0_i32_0 = arith.constant 0 : i32
    %c0_i32_1 = arith.constant 0 : i32
    return %c0_i32, %c0_i32_0 : i32, i32
  }
  func.func @transform_2(%arg0: i32, %arg1: i32) -> (i32, i32) {
    %c0_i32 = arith.constant 0 : i32
    %c0_i32_0 = arith.constant 0 : i32
    %c0_i32_1 = arith.constant 0 : i32
    return %c0_i32, %c0_i32_0 : i32, i32
  }
  func.func @transform_3(%arg0: i32, %arg1: i32) -> (i32, i32) {
    %c0_i32 = arith.constant 0 : i32
    %c0_i32_0 = arith.constant 0 : i32
    %c0_i32_1 = arith.constant 0 : i32
    return %c0_i32, %c0_i32_0 : i32, i32
  }
  func.func @transform_4(%arg0: i32, %arg1: i32) -> (i32, i32) {
    %c0_i32 = arith.constant 0 : i32
    %c0_i32_0 = arith.constant 0 : i32
    %c0_i32_1 = arith.constant 0 : i32
    return %c0_i32, %c0_i32_0 : i32, i32
  }
  func.func @transform_5(%arg0: i32, %arg1: i32) -> (i32, i32) {
    %c0_i32 = arith.constant 0 : i32
    %c0_i32_0 = arith.constant 0 : i32
    %c0_i32_1 = arith.constant 0 : i32
    return %c0_i32, %c0_i32_0 : i32, i32
  }
  func.func @transform_6(%arg0: i32, %arg1: i32) -> (i32, i32) {
    %c0_i32 = arith.constant 0 : i32
    %c0_i32_0 = arith.constant 0 : i32
    return %arg0, %c0_i32 : i32, i32
  }
  func.func @transform_7(%arg0: i32, %arg1: i32) -> (i32, i32) {
    %c0_i32 = arith.constant 0 : i32
    %c0_i32_0 = arith.constant 0 : i32
    return %arg0, %c0_i32 : i32, i32
  }
  func.func @transform_8(%arg0: i32, %arg1: i32) -> (i32, i32) {
    %c0_i32 = arith.constant 0 : i32
    %c0_i32_0 = arith.constant 0 : i32
    return %arg0, %c0_i32 : i32, i32
  }
  func.func @transform_9(%arg0: i32, %arg1: i32) -> (i32, i32) {
    %c0_i32 = arith.constant 0 : i32
    %c0_i32_0 = arith.constant 0 : i32
    return %arg0, %c0_i32 : i32, i32
  }
  func.func @transform_10(%arg0: i32, %arg1: i32) -> (i32, i32) {
    %c0_i32 = arith.constant 0 : i32
    %c0_i32_0 = arith.constant 0 : i32
    return %arg0, %c0_i32 : i32, i32
  }
}

</mosaic_0001>

<bundles_post_ra>
// kernel: tpu_custom_call.1
= control target key start
LH: loop header
LB: loop body
LE: loop exit
PB: predicated region body
PF: predicated region fallthrough
CT: control target
= control target key end

     0   :  { %s3284_s0 = inlined_call_operand.hbm [shape: bf16[8,8,128], index: 0, kind: input, shape index: {}]   ;;  %s3285_s1 = inlined_call_operand.hbm [shape: bf16[128,512], index: 1, kind: input, shape index: {}]   ;;  %s3286_s2 = inlined_call_operand.hbm [shape: bf16[128,512], index: 2, kind: input, shape index: {}]   ;;  %s3287_s3 = inlined_call_operand.hbm [shape: f32[1,512], index: 3, kind: input, shape index: {}]   ;;  %s3288_s4 = inlined_call_operand.hbm [shape: bf16[128,128], index: 4, kind: input, shape index: {}]   ;;  %s3289_s5 = inlined_call_operand.vmem [shape: f32[1,128], index: 5, kind: input, shape index: {}]   ;;  %s3290_s6 = inlined_call_operand.vmem [shape: f32[8,128], index: 6, kind: input, shape index: {}]   ;;  %s3291_s7 = inlined_call_operand.vmem [shape: f32[8,128], index: 7, kind: input, shape index: {}]   ;;  %s3292_s8 = inlined_call_operand.hbm [shape: f32[8,128], index: 8, kind: output, shape index: {0}]   ;;  %s3293_s9 = inlined_call_operand.hbm [shape: f32[8,128], index: 9, kind: output, shape index: {1}]   ;;  %s3294_s10 = inlined_call_operand.hbm [shape: f32[8,128], index: 10, kind: output, shape index: {2}]  }
   0x1   :  { %3303 = sst [smem:[#allocation21_spill]] %s3289_s5 }
   0x2   :  { %3304 = sst [smem:[#allocation22_spill]] %s3292_s8 }
   0x3   :  { %3305 = sst [smem:[#allocation23_spill]] %s3293_s9 }
   0x4   :  { %3306 = sst [smem:[#allocation24_spill]] %s3294_s10 }
   0x5   :  { %16 = vsyncpa [#allocation4], 0 }
   0x6   :  { %18 = vsyncpa [#allocation4 + $0x1], 0 }
   0x7   :  { %19 = vsyncpa [#allocation7], 0 }
   0x8   :  { %20 = vsyncpa [#allocation10], 0 }
   0x9   :  { %21 = vsyncpa [#allocation5], 0 }
   0xa   :  { %22 = vsyncpa [#allocation14], 0  ;;  %s2708_s13 = smov 0   ;;  %s2710_s14 = smov 0  }
   0xb   :  { %s2712_s15 = smov 0   ;;  %s2714_s16 = smov 0  }
   0xc   :  { %s2716_s17 = smov 0   ;;  %s2718_s18 = smov 0  }
   0xd LB: > { %s3295_s19 = sadd.s32 4294967295, %s2636_s18   ;;  %p62_p0 = scmp.ne.s32.totalorder %s2620_s14, %s2616_s13  ;;  %s2636_s18 = sphi %s2718_s18, %s28_s18   ;;  %s2632_s17 = sphi %s2716_s17, %s3327_s17   ;;  %s2628_s16 = sphi %s2714_s16, %s3326_s16   ;;  %s2624_s15 = sphi %s2712_s15, %s3325_s15   ;;  %s2620_s14 = sphi %s2710_s14, %s3324_s14   ;;  %s2616_s13 = sphi %s2708_s13, %s3323_s13  }
   0xe   : > { %p2740_p1 = scmp.eq.s32.totalorder %s3295_s19, 0  ;;  %p1892_p2 = scmp.ge.s32.totalorder %s2636_s18, 1 }
   0xf   : > { %p308_p3 = scmp.lt.s32.totalorder %s2636_s18, 3  ;;  %s2638_s23 = smov [#allocation6]  }
  0x10   : > { %s3307_s20 = scalar_select %p2740_p1, 1, 0 }
  0x11   : > { %p2748_p4 = por %p2740_p1, %p62_p0  ;;  %p2752_p5 = pnand %p1892_p2, %p308_p3 }
  0x12   : > { %s320_s24 = sshll.u32 %s2638_s23, 4  ;;  %s2639_s26 = smov [#allocation9]   ;;  %s2756_s24 = int_to_ptr.vmem [resolvable:$true] %s320_s24 }
  0x13   : > { %s3308_s21 = scalar_select %p2748_p4, 1, 0 }
  0x14   : > { %s3309_s22 = scalar_select %p2752_p5, 1, 0 }
  0x15   : > { %p2082_p6 = pneg %p2752_p5  ;;  %s347_s27 = sshll.u32 %s2639_s26, 4  ;;  %s2766_s27 = int_to_ptr.vmem [resolvable:$true] %s347_s27 }
  0x16   : > { %s2640_s28 = smov [#allocation8]   ;;  %s2350_s12 = scalar_lea.hbm %s3285_s1, 4096 }
  0x17   : > { %p2762_p7 = pnand %p2082_p6, %p2740_p1  ;;  %s2768_s29 = sshll.u32 %s2640_s28, 4  ;;  %s334_s29 = int_to_ptr.vmem [resolvable:$true] %s2768_s29 }
  0x18   : > { %p2351_p8 = scmp.ne.s32.totalorder %s3285_s1, %s2350_s12  ;;  %p2357_p12 = scmp.lt.u32.totalorder %s2350_s12, %s3285_s1 }
  0x19   : > { %p2778_p9 = pneg %p2762_p7 }
  0x1b   : > { %p2353_p10 = pnand %p2778_p9, %p2351_p8 }
  0x1d   : > { %p2354_p11 = pneg %p2353_p10 }
  0x1f   : > { %p2359_p13 = pnand %p2357_p12, %p2354_p11 }
  0x21   : > { %2362 = shalt.err (!%p2359_p13)
}
  0x22   : > { %s2363_s30 = scalar_lea.vmem %s2756_s24, 4096  ;;  %p2371_p6 = scmp.lt.s32.totalorder %s2756_s24, %s2756_s24 }
  0x23   : > { %p2364_p0 = scmp.ne.s32.totalorder %s2756_s24, %s2363_s30  ;;  %p2372_p1 = scmp.lt.s32.totalorder %s2363_s30, %s2363_s30 }
  0x25   : > { %p2366_p2 = pnand %p2364_p0, %p2778_p9  ;;  %p2373_p8 = por %p2372_p1, %p2371_p6 }
  0x27   : > { %p2367_p3 = pneg %p2366_p2 }
  0x29   : > { %p2374_p10 = pnand %p2373_p8, %p2367_p3 }
  0x2b   : > { %2377 = shalt.err (!%p2374_p10)
}
  0x2c   : > { %s2641_s11 = smov 256   ;;  %s2642_s12 = smov 16  }
  0x2d   : > { %2085 = dma.hbm_to_vmem [thread:$0]  (!%p2762_p7), %s3285_s1, 4096, %s2756_s24, [#allocation7], %s2641_s11, %s2641_s11, %s2642_s12  }
  0x2e   : > { %s2378_s30 = scalar_lea.hbm %s3287_s3, 64 }
  0x2f   : > { %p2379_p1 = scmp.ne.s32.totalorder %s3287_s3, %s2378_s30  ;;  %p2385_p13 = scmp.lt.u32.totalorder %s2378_s30, %s3287_s3 }
  0x31   : > { %p2381_p11 = pnand %p2379_p1, %p2778_p9 }
  0x33   : > { %p2382_p12 = pneg %p2381_p11 }
  0x35   : > { %p2387_p0 = pnand %p2385_p13, %p2382_p12 }
  0x37   : > { %2390 = shalt.err (!%p2387_p0)
}
  0x38   : > { %s2391_s24 = scalar_lea.vmem %s2766_s27, 64  ;;  %p2399_p8 = scmp.lt.s32.totalorder %s2766_s27, %s2766_s27 }
  0x39   : > { %p2392_p2 = scmp.ne.s32.totalorder %s2766_s27, %s2391_s24  ;;  %p2400_p10 = scmp.lt.s32.totalorder %s2391_s24, %s2391_s24 }
  0x3b   : > { %p2394_p3 = pnand %p2392_p2, %p2778_p9  ;;  %p2401_p1 = por %p2400_p10, %p2399_p8 }
  0x3d   : > { %p2395_p6 = pneg %p2394_p3 }
  0x3f   : > { %p2402_p11 = pnand %p2401_p1, %p2395_p6 }
  0x41   : > { %2405 = shalt.err (!%p2402_p11)
}
  0x42   : > { %2091 = dma.hbm_to_vmem [thread:$0]  (!%p2762_p7), %s3287_s3, 64, %s2766_s27, [#allocation10]  }
  0x43   : > { %s2406_s13 = scalar_lea.hbm %s3286_s2, 4096 }
  0x44   : > { %p2407_p12 = scmp.ne.s32.totalorder %s3286_s2, %s2406_s13  ;;  %p2413_p2 = scmp.lt.u32.totalorder %s2406_s13, %s3286_s2 }
  0x46   : > { %p2409_p13 = pnand %p2407_p12, %p2778_p9 }
  0x48   : > { %p2410_p0 = pneg %p2409_p13 }
  0x4a   : > { %p2415_p3 = pnand %p2413_p2, %p2410_p0 }
  0x4c   : > { %2418 = shalt.err (!%p2415_p3)
}
  0x4d   : > { %s2419_s24 = scalar_lea.vmem %s334_s29, 4096  ;;  %p2427_p1 = scmp.lt.s32.totalorder %s334_s29, %s334_s29 }
  0x4e   : > { %p2420_p6 = scmp.ne.s32.totalorder %s334_s29, %s2419_s24  ;;  %p2428_p11 = scmp.lt.s32.totalorder %s2419_s24, %s2419_s24 }
  0x50   : > { %p2422_p8 = pnand %p2420_p6, %p2778_p9  ;;  %p2429_p4 = por %p2428_p11, %p2427_p1 }
  0x52   : > { %p2423_p10 = pneg %p2422_p8 }
  0x54   : > { %p2430_p5 = pnand %p2429_p4, %p2423_p10 }
  0x56   : > { %2433 = shalt.err (!%p2430_p5)
}
  0x57   : > { %2088 = dma.hbm_to_vmem [thread:$0]  (!%p2762_p7), %s3286_s2, 4096, %s334_s29, [#allocation7], %s2641_s11, %s2641_s11, %s2642_s12  }
  0x58   : > { %s2643_s8 = smov [#allocation11]   ;;  %s2434_s23 = scalar_lea.hbm %s3288_s4, 1024 }
  0x59   : > { %s357_s9 = sshll.u32 %s2643_s8, 4  ;;  %p2435_p4 = scmp.ne.s32.totalorder %s3288_s4, %s2434_s23  ;;  %s358_s9 = int_to_ptr.vmem [resolvable:$true] %s357_s9 }
  0x5a   : > { %p2441_p13 = scmp.lt.u32.totalorder %s2434_s23, %s3288_s4 }
  0x5b   : > { %p2437_p5 = pnand %p2435_p4, %p2778_p9 }
  0x5d   : > { %p2438_p12 = pneg %p2437_p5 }
  0x5f   : > { %p2443_p0 = pnand %p2441_p13, %p2438_p12 }
  0x61   : > { %2446 = shalt.err (!%p2443_p0)
}
  0x62   : > { %s2447_s29 = scalar_lea.vmem %s358_s9, 1024  ;;  %p2455_p8 = scmp.lt.s32.totalorder %s358_s9, %s358_s9 }
  0x63   : > { %p2448_p2 = scmp.ne.s32.totalorder %s358_s9, %s2447_s29  ;;  %p2456_p10 = scmp.lt.s32.totalorder %s2447_s29, %s2447_s29 }
  0x65   : > { %p2450_p3 = pnand %p2448_p2, %p2778_p9  ;;  %p2457_p1 = por %p2456_p10, %p2455_p8 }
  0x67   : > { %p2451_p6 = pneg %p2450_p3 }
  0x69   : > { %p2458_p11 = pnand %p2457_p1, %p2451_p6 }
  0x6b   : > { %2461 = shalt.err (!%p2458_p11)
}
  0x6c   : > { %s2644_s11 = smov 64   ;;  %s2645_s19 = smov 4  }
  0x6d   : > { %2094 = dma.hbm_to_vmem [thread:$0]  (!%p2762_p7), %s3288_s4, 1024, %s358_s9, [#allocation10], %s2644_s11, %s2644_s11, %s2645_s19  }
  0x6e   : > { %s37_s5 = sadd.s32 1, %s2632_s17  ;;  %s49_s8 = sadd.s32 1, %s2624_s15 }
  0x6f   : > { %p38_p9 = scmp.ge.s32.totalorder %s37_s5, 2  ;;  %p56_p4 = scmp.ne.s32.totalorder %s2624_s15, %s2620_s14 }
  0x70   : > { %p57_p5 = scmp.eq.s32.totalorder %s2636_s18, 0  ;;  %p2103_p12 = scmp.lt.s32.totalorder %s2636_s18, 2 }
  0x71   : > { %s3329_s5 = smov (%p38_p9, %s37_s5), 0  ;;  %s388_s10 = sand.u32 1, %s2624_s15  }
  0x72   : > { %p58_p13 = por %p57_p5, %p56_p4  ;;  %s44_s25 = ssub.s32 %s2632_s17, %s3329_s5 }
  0x73   : > { %p47_p0 = scmp.eq.s32.totalorder %s44_s25, 0  ;;  %s1900_s13 = sshll.u32 %s388_s10, 4 }
  0x74   : > { %s2014_s23 = sshll.u32 %s2632_s17, 8  ;;  %s392_s24 = scalar_lea.vmem [#allocation3], %s1900_s13 }
  0x75   : > { %s2881_s26 = scalar_select %p47_p0, %s2624_s15, %s49_s8  }
  0x76   : > { %s2886_s30 = scalar_lea.hbm %s3284_s0, %s2014_s23  ;;  %s400_s29 = sshll.u32 %s392_s24, 4  ;;  %s2888_s29 = int_to_ptr.vmem [resolvable:$true] %s400_s29 }
  0x77   : > { %p2892_p7 = pnand %p2103_p12, %p58_p13  ;;  %s2896_s27 = scalar_lea.sflag [#allocation4], %s388_s10 }
  0x78   : > { %s2462_s8 = scalar_lea.hbm %s2886_s30, 256  ;;  %s2467_s23 = scalar_lea.hbm %s3284_s0, 512 }
  0x79   : > { %p2463_p2 = scmp.ne.s32.totalorder %s2886_s30, %s2462_s8  ;;  %p2464_p3 = pneg %p2892_p7 }
  0x7a   : > { %p2468_p10 = scmp.lt.u32.totalorder %s2886_s30, %s3284_s0  ;;  %p2469_p1 = scmp.lt.u32.totalorder %s2467_s23, %s2462_s8 }
  0x7b   : > { %p2465_p6 = pnand %p2464_p3, %p2463_p2  ;;  %p2471_p9 = scmp.lt.u32.totalorder %s2462_s8, %s2886_s30 }
  0x7c   : > { %p2470_p11 = por %p2469_p1, %p2468_p10 }
  0x7d   : > { %p2466_p8 = pneg %p2465_p6 }
  0x7e   : > { %p2472_p4 = por %p2471_p9, %p2470_p11 }
  0x80   : > { %p2473_p5 = pnand %p2472_p4, %p2466_p8 }
  0x82   : > { %2476 = shalt.err (!%p2473_p5)
}
  0x83   : > { %s2477_s10 = scalar_lea.vmem %s2888_s29, 256  ;;  %s2646_s24 = smov [#allocation3]  }
  0x84   : > { %p2478_p12 = scmp.ne.s32.totalorder %s2888_s29, %s2477_s10  ;;  %s2482_s25 = sshll.u32 %s2646_s24, 4  ;;  %s2483_s25 = int_to_ptr.vmem [resolvable:$false] %s2482_s25 }
  0x85   : > { %s2484_s13 = scalar_lea.vmem %s2483_s25, 512  ;;  %p2485_p2 = scmp.lt.s32.totalorder %s2888_s29, %s2483_s25 }
  0x86   : > { %p2480_p13 = pnand %p2478_p12, %p2464_p3  ;;  %p2486_p6 = scmp.lt.s32.totalorder %s2484_s13, %s2477_s10 }
  0x88   : > { %p2481_p0 = pneg %p2480_p13  ;;  %p2487_p10 = por %p2486_p6, %p2485_p2 }
  0x8a   : > { %p2488_p1 = pnand %p2487_p10, %p2481_p0 }
  0x8c   : > { %2491 = shalt.err (!%p2488_p1)
}
  0x8d   : > { %2098 = dma.hbm_to_vmem [thread:$0]  (!%p2892_p7), %s2886_s30, 256, %s2888_s29, %s2896_s27, %s2644_s11, %s2644_s11, %s2645_s19  }
  0x8e   : > { %p3313_p3 = scmp.ne.s32.totalorder %s3309_s22, 0 }
  0x8f   : > { %s414_s8 = sand.u32 (!%p3313_p3), 1, %s2620_s14   ;;  %p3314_p8 = scmp.ne.s32.totalorder (!%p3313_p3), %s3308_s21, 0 }
  0x90   : > { %412 = sbr.rel (%p3313_p3) target bundleno = 1901 (0x76d), region = 52  ;;  %s2930_s23 = sshll.u32 (!%p3313_p3), %s414_s8, 4 }
  0x91   : > { %s415_s28 = scalar_lea.sflag (!%p3313_p3), [#allocation4], %s414_s8  ;;  %s418_s9 = scalar_lea.vmem (!%p3313_p3), [#allocation3], %s2930_s23 }
  0x97   : > { %2595 = dma.done.wait (%p3314_p8), %s415_s28, 256  }
  0x98   : > { %2597 = vsyncadd (%p3314_p8), %s415_s28, 4294967040  ;;  %p3315_p11 = scmp.ne.s32.totalorder %s3307_s20, 0 }
  0x9a   : > { %2599 = dma.done.wait (%p3315_p11), [#allocation7], 8192  }
  0x9b   : > { %2601 = vsyncadd (%p3315_p11), [#allocation7], 4294959104 }
  0x9c   : > { %2603 = dma.done.wait (%p3315_p11), [#allocation10], 1088  }
  0x9d   : > { %2605 = vsyncadd (%p3315_p11), [#allocation10], 4294966208  ;;  %p1909_p7 = scmp.ne.s32.totalorder %s2628_s16, 0 }
  0x9e   : > { %v488_v0 = vld [vmem:[%s3290_s6] sm:$0xff] (!%p1909_p7) }
  0x9f   : > { %487 = sbr.rel (%p1909_p7) target bundleno = 166 (0xa6), region = 76  ;;  %v490_v1 = vld [vmem:[%s3291_s7] sm:$0xff] (!%p1909_p7)  ;;  %489 = vst [vmem:[#allocation13] sm:$0xff] (!%p1909_p7), %v488_v0 }
  0xa0   : > { %491 = vst [vmem:[#allocation15] sm:$0xff] (!%p1909_p7), %v490_v1 }
  0xa6 PF: > { %v2176_v2 = vld [vmem:[#allocation6 + $0x4] ss:$16 sps:$4 sm:$0xff]   ;;  %v2178_v3 = vld [vmem:[#allocation6 + $0xc] ss:$16 sps:$4 sm:$0xff]   ;;  %v2647_v4 = vmov 0   ;;  %p1996_p9 = scmp.ne.s32.totalorder %s2628_s16, 1 }
  0xa7   : > { %754 = vmatprep.mubr.bf16.mxu0 %v2647_v4  ;;  %807 = vmatprep.mubr.bf16.mxu1 %v2647_v4  ;;  %v2180_v5 = vld [vmem:[#allocation6] ss:$16 sps:$4 sm:$0xff]   ;;  %v2181_v6 = vld [vmem:[#allocation6 + $0x8] ss:$16 sps:$4 sm:$0xff]   ;;  %v2182_v7 = vld [vmem:[#allocation6 + $0x24] ss:$16 sps:$4 sm:$0xff]  }
  0xa8   : > { %722 = vmatprep.subr.bf16.mxu0 %v2176_v2  ;;  %775 = vmatprep.subr.bf16.mxu1 %v2178_v3  ;;  %v2184_v8 = vld [vmem:[#allocation6 + $0x2c] ss:$16 sps:$4 sm:$0xff]   ;;  %v2186_v9 = vld [vmem:[#allocation6 + $0x20] ss:$16 sps:$4 sm:$0xff]   ;;  %v2187_v10 = vld [vmem:[#allocation6 + $0x28] ss:$16 sps:$4 sm:$0xff]  }
  0xa9   : > { %723 = vmatpush1.bf16.msra.mxu0 %v2180_v5  ;;  %776 = vmatpush1.bf16.msra.mxu1 %v2181_v6  ;;  %v2188_v11 = vld [vmem:[#allocation6 + $0x44] ss:$16 sps:$4 sm:$0xff]   ;;  %v2190_v12 = vld [vmem:[#allocation6 + $0x4c] ss:$16 sps:$4 sm:$0xff]   ;;  %v2192_v13 = vld [vmem:[#allocation6 + $0x40] ss:$16 sps:$4 sm:$0xff]  }
  0xaa   : > { %724 = vmatprep.subr.bf16.mxu0 %v2182_v7  ;;  %777 = vmatprep.subr.bf16.mxu1 %v2184_v8  ;;  %v2193_v14 = vld [vmem:[#allocation6 + $0x48] ss:$16 sps:$4 sm:$0xff]   ;;  %v2194_v15 = vld [vmem:[#allocation6 + $0x64] ss:$16 sps:$4 sm:$0xff]   ;;  %v2196_v16 = vld [vmem:[#allocation6 + $0x6c] ss:$16 sps:$4 sm:$0xff]   ;;  %v530_v8 = vlaneseq }
  0xab   : > { %v2198_v17 = vld [vmem:[#allocation6 + $0x60] ss:$16 sps:$4 sm:$0xff]   ;;  %v2199_v18 = vld [vmem:[#allocation6 + $0x68] ss:$16 sps:$4 sm:$0xff]   ;;  %v2200_v19 = vld [vmem:[#allocation6 + $0x84] ss:$16 sps:$4 sm:$0xff]  }
  0xac   : > { %v2202_v20 = vld [vmem:[#allocation6 + $0x8c] ss:$16 sps:$4 sm:$0xff]   ;;  %v2204_v21 = vld [vmem:[#allocation6 + $0x80] ss:$16 sps:$4 sm:$0xff]   ;;  %v2205_v22 = vld [vmem:[#allocation6 + $0x88] ss:$16 sps:$4 sm:$0xff]  }
  0xad   : > { %725 = vmatpush1.bf16.msra.mxu0 %v2186_v9  ;;  %778 = vmatpush1.bf16.msra.mxu1 %v2187_v10  ;;  %v2206_v23 = vld [vmem:[#allocation6 + $0xa4] ss:$16 sps:$4 sm:$0xff]   ;;  %v2208_v24 = vld [vmem:[#allocation6 + $0xac] ss:$16 sps:$4 sm:$0xff]   ;;  %v2210_v25 = vld [vmem:[#allocation6 + $0xa0] ss:$16 sps:$4 sm:$0xff]  }
  0xae   : > { %726 = vmatprep.subr.bf16.mxu0 %v2188_v11  ;;  %779 = vmatprep.subr.bf16.mxu1 %v2190_v12  ;;  %v2211_v26 = vld [vmem:[#allocation6 + $0xa8] ss:$16 sps:$4 sm:$0xff]   ;;  %v2212_v27 = vld [vmem:[#allocation6 + $0xc4] ss:$16 sps:$4 sm:$0xff]   ;;  %v2214_v28 = vld [vmem:[#allocation6 + $0xcc] ss:$16 sps:$4 sm:$0xff]  }
  0xaf   : > { %v2216_v29 = vld [vmem:[#allocation6 + $0xc0] ss:$16 sps:$4 sm:$0xff]   ;;  %v2217_v30 = vld [vmem:[#allocation6 + $0xc8] ss:$16 sps:$4 sm:$0xff]   ;;  %v2218_v31 = vld [vmem:[#allocation6 + $0xe4] ss:$16 sps:$4 sm:$0xff]  }
  0xb0   : > { %v2220_v32 = vld [vmem:[#allocation6 + $0xec] ss:$16 sps:$4 sm:$0xff]   ;;  %v2222_v33 = vld [vmem:[#allocation6 + $0xe0] ss:$16 sps:$4 sm:$0xff]   ;;  %v2223_v34 = vld [vmem:[#allocation6 + $0xe8] ss:$16 sps:$4 sm:$0xff]  }
  0xb1   : > { %727 = vmatpush1.bf16.msra.mxu0 %v2192_v13  ;;  %780 = vmatpush1.bf16.msra.mxu1 %v2193_v14  ;;  %v2954_v35 = vld [vmem:[#allocation8 + $0x4] ss:$16 sps:$4 sm:$0xff]   ;;  %v2956_v36 = vld [vmem:[#allocation8 + $0xc] ss:$16 sps:$4 sm:$0xff]   ;;  %v2960_v38 = vld [vmem:[#allocation8] ss:$16 sps:$4 sm:$0xff]  }
  0xb2   : > { %728 = vmatprep.subr.bf16.mxu0 %v2194_v15  ;;  %781 = vmatprep.subr.bf16.mxu1 %v2196_v16  ;;  %v2224_v37 = vld [vmem:[%s418_s9] sm:$0xff]   ;;  %v2962_v39 = vld [vmem:[#allocation8 + $0x8] ss:$16 sps:$4 sm:$0xff]   ;;  %v2968_v41 = vld [vmem:[#allocation8 + $0x2c] ss:$16 sps:$4 sm:$0xff]   ;;  %v531_v9 = vshrl.u32 %v530_v8, 7 }
  0xb3   : > { %v2964_v40 = vld [vmem:[#allocation8 + $0x24] ss:$16 sps:$4 sm:$0xff]   ;;  %v2970_v42 = vld [vmem:[#allocation8 + $0x20] ss:$16 sps:$4 sm:$0xff]   ;;  %v2972_v43 = vld [vmem:[#allocation8 + $0x28] ss:$16 sps:$4 sm:$0xff]  }
  0xb4   : > { %v2976_v44 = vld [vmem:[#allocation8 + $0x44] ss:$16 sps:$4 sm:$0xff]   ;;  %v2980_v45 = vld [vmem:[#allocation8 + $0x4c] ss:$16 sps:$4 sm:$0xff]   ;;  %v2982_v46 = vld [vmem:[#allocation8 + $0x40] ss:$16 sps:$4 sm:$0xff]  }
  0xb5   : > { %729 = vmatpush1.bf16.msra.mxu0 %v2198_v17  ;;  %782 = vmatpush1.bf16.msra.mxu1 %v2199_v18  ;;  %v2259_v47 = vld [vmem:[%s418_s9 + $0x8] sm:$0xff]   ;;  %v2994_v49 = vld [vmem:[#allocation8 + $0x64] ss:$16 sps:$4 sm:$0xff]   ;;  %v3000_v51 = vld [vmem:[#allocation8 + $0x60] ss:$16 sps:$4 sm:$0xff]   ;;  %v532_v10 = vsub.s32 0, %v531_v9 }
  0xb6   : > { %730 = vmatprep.subr.bf16.mxu0 %v2200_v19  ;;  %783 = vmatprep.subr.bf16.mxu1 %v2202_v20  ;;  %v2990_v48 = vld [vmem:[#allocation8 + $0x48] ss:$16 sps:$4 sm:$0xff]   ;;  %v2996_v50 = vld [vmem:[#allocation8 + $0x6c] ss:$16 sps:$4 sm:$0xff]   ;;  %v3006_v53 = vld [vmem:[#allocation8 + $0x84] ss:$16 sps:$4 sm:$0xff]  }
  0xb7   : > { %v3002_v52 = vld [vmem:[#allocation8 + $0x68] ss:$16 sps:$4 sm:$0xff]   ;;  %v3008_v54 = vld [vmem:[#allocation8 + $0x8c] ss:$16 sps:$4 sm:$0xff]   ;;  %v3014_v55 = vld [vmem:[#allocation8 + $0x80] ss:$16 sps:$4 sm:$0xff]  }
  0xb8   : > { %v3016_v56 = vld [vmem:[#allocation8 + $0x88] ss:$16 sps:$4 sm:$0xff]   ;;  %v3020_v57 = vld [vmem:[#allocation8 + $0xa4] ss:$16 sps:$4 sm:$0xff]   ;;  %v3022_v58 = vld [vmem:[#allocation8 + $0xac] ss:$16 sps:$4 sm:$0xff]  }
  0xb9   : > { %731 = vmatpush1.bf16.msra.mxu0 %v2204_v21  ;;  %784 = vmatpush1.bf16.msra.mxu1 %v2205_v22  ;;  %v3026_v59 = vld [vmem:[#allocation8 + $0xa0] ss:$16 sps:$4 sm:$0xff]   ;;  %v3028_v60 = vld [vmem:[#allocation8 + $0xa8] ss:$16 sps:$4 sm:$0xff]   ;;  %v3032_v61 = vld [vmem:[#allocation8 + $0xc4] ss:$16 sps:$4 sm:$0xff]  }
  0xba   : > { %732 = vmatprep.subr.bf16.mxu0 %v2206_v23  ;;  %785 = vmatprep.subr.bf16.mxu1 %v2208_v24  ;;  %v3034_v62 = vld [vmem:[#allocation8 + $0xcc] ss:$16 sps:$4 sm:$0xff]   ;;  %v3038_v63 = vld [vmem:[#allocation8 + $0xc0] ss:$16 sps:$4 sm:$0xff]   ;;  %v3040_v0 = vld [vmem:[#allocation8 + $0xc8] ss:$16 sps:$4 sm:$0xff]  }
  0xbb   : > { %v3044_v1 = vld [vmem:[#allocation8 + $0xe4] ss:$16 sps:$4 sm:$0xff]   ;;  %v3046_v2 = vld [vmem:[#allocation8 + $0xec] ss:$16 sps:$4 sm:$0xff]   ;;  %v3050_v3 = vld [vmem:[#allocation8 + $0xe0] ss:$16 sps:$4 sm:$0xff]  }
  0xbc   : > { %v3052_v5 = vld [vmem:[#allocation8 + $0xe8] ss:$16 sps:$4 sm:$0xff]   ;;  %v932_v6 = vld [vmem:[#allocation13] sm:$0xff]  ;;  %v540_v11 = vsub.s32 2, %v531_v9  ;;  %v528_v12 = vld [vmem:[#allocation9] sm:$0xf] }
  0xbd   : > { %733 = vmatpush1.bf16.msra.mxu0 %v2210_v25  ;;  %786 = vmatpush1.bf16.msra.mxu1 %v2211_v26  ;;  %v940_v7 = vpack.c.bf16 %v932_v6, %v932_v6  ;;  %v536_v13 = vsub.s32 1, %v531_v9  ;;  %v544_v14 = vsub.s32 3, %v531_v9  ;;  %v533_v15 = vrot.slane %v528_v12, %v532_v10  ;;  %s3316_s30 = sld [smem:[#allocation21_spill]] (!%p1996_p9) }
  0xbe   : > { %734 = vmatprep.subr.bf16.mxu0 %v2212_v27  ;;  %787 = vmatprep.subr.bf16.mxu1 %v2214_v28  ;;  %v541_v16 = vrot.slane %v528_v12, %v540_v11  ;;  %vm2649_vm0 = vmmov (!%p1996_p9), 0  }
  0xbf   : > { %v537_v17 = vrot.slane %v528_v12, %v536_v13  ;;  %v545_v18 = vrot.slane %v528_v12, %v544_v14 }
  0xc1   : > { %735 = vmatpush1.bf16.msra.mxu0 %v2216_v29  ;;  %788 = vmatpush1.bf16.msra.mxu1 %v2217_v30 }
  0xc2   : > { %736 = vmatprep.subr.bf16.mxu0 %v2218_v31  ;;  %789 = vmatprep.subr.bf16.mxu1 %v2220_v32 }
  0xc5   : > { %737 = vmatpush1.bf16.msra.mxu0 %v2222_v33  ;;  %790 = vmatpush1.bf16.msra.mxu1 %v2223_v34 }
  0xc6   : > { %1101 = vmatprep.subr.bf16.mxu0 %v2954_v35  ;;  %1142 = vmatprep.subr.bf16.mxu1 %v2956_v36 }
  0xc8   : > { %755 = vmatmul.mubr.bf16.vlgmr.msra.gmra.mrb[0].mxu0 %v2224_v37  ;;  %808 = vmatmul.mubr.bf16.vlgmr.msra.gmra.mrb[0].mxu1 %v2224_v37 }
  0xc9   : > { %1102 = vmatpush1.bf16.msra.mxu0 %v2960_v38  ;;  %1143 = vmatpush1.bf16.msra.mxu1 %v2962_v39 }
  0xca   : > { %1103 = vmatprep.subr.bf16.mxu0 %v2964_v40  ;;  %1144 = vmatprep.subr.bf16.mxu1 %v2968_v41 }
  0xcb   : > { %764 = vmatprep.mubr.bf16.mxu0 %v2647_v4  ;;  %817 = vmatprep.mubr.bf16.mxu1 %v2647_v4 }
  0xcd   : > { %1104 = vmatpush1.bf16.msra.mxu0 %v2970_v42  ;;  %1145 = vmatpush1.bf16.msra.mxu1 %v2972_v43 }
  0xce   : > { %1105 = vmatprep.subr.bf16.mxu0 %v2976_v44  ;;  %1146 = vmatprep.subr.bf16.mxu1 %v2980_v45 }
  0xd0   : > { %765 = vmatmul.mubr.bf16.gmra.mrb[4].mxu0 %v2259_v47  ;;  %818 = vmatmul.mubr.bf16.gmra.mrb[4].mxu1 %v2259_v47 }
  0xd1   : > { %1106 = vmatpush1.bf16.msra.mxu0 %v2982_v46  ;;  %1147 = vmatpush1.bf16.msra.mxu1 %v2990_v48 }
  0xd2   : > { %1107 = vmatprep.subr.bf16.mxu0 %v2994_v49  ;;  %1148 = vmatprep.subr.bf16.mxu1 %v2996_v50 }
  0xd3   : > { %1133 = vmatprep.mubr.bf16.mxu0 %v2647_v4  ;;  %1174 = vmatprep.mubr.bf16.mxu1 %v2647_v4 }
  0xd5   : > { %1108 = vmatpush1.bf16.msra.mxu0 %v3000_v51  ;;  %1149 = vmatpush1.bf16.msra.mxu1 %v3002_v52 }
  0xd6   : > { %1109 = vmatprep.subr.bf16.mxu0 %v3006_v53  ;;  %1150 = vmatprep.subr.bf16.mxu1 %v3008_v54 }
  0xd9   : > { %1110 = vmatpush1.bf16.msra.mxu0 %v3014_v55  ;;  %1151 = vmatpush1.bf16.msra.mxu1 %v3016_v56 }
  0xda   : > { %1111 = vmatprep.subr.bf16.mxu0 %v3020_v57  ;;  %1152 = vmatprep.subr.bf16.mxu1 %v3022_v58 }
  0xdd   : > { %1112 = vmatpush1.bf16.msra.mxu0 %v3026_v59  ;;  %1153 = vmatpush1.bf16.msra.mxu1 %v3028_v60 }
  0xde   : > { %1113 = vmatprep.subr.bf16.mxu0 %v3032_v61  ;;  %1154 = vmatprep.subr.bf16.mxu1 %v3034_v62 }
  0xe1   : > { %1114 = vmatpush1.bf16.msra.mxu0 %v3038_v63  ;;  %1155 = vmatpush1.bf16.msra.mxu1 %v3040_v0 }
  0xe2   : > { %1115 = vmatprep.subr.bf16.mxu0 %v3044_v1  ;;  %1156 = vmatprep.subr.bf16.mxu1 %v3046_v2 }
  0xe5   : > { %1116 = vmatpush1.bf16.msra.mxu0 %v3050_v3  ;;  %1157 = vmatpush1.bf16.msra.mxu1 %v3052_v5 }
  0xe6   : > { %1219 = vmatprep.subr.bf16.mxu0 %v2954_v35  ;;  %1260 = vmatprep.subr.bf16.mxu1 %v2956_v36 }
  0xe8   : > { %1134 = vmatmul.mubr.bf16.vlgmr.msra.gmra.mrb[8].mxu0 %v940_v7  ;;  %1175 = vmatmul.mubr.bf16.vlgmr.msra.gmra.mrb[8].mxu1 %v940_v7 }
  0xe9   : > { %1220 = vmatpush1.bf16.msra.mxu0 %v2960_v38  ;;  %1261 = vmatpush1.bf16.msra.mxu1 %v2962_v39 }
  0xea   : > { %1221 = vmatprep.subr.bf16.mxu0 %v2964_v40  ;;  %1262 = vmatprep.subr.bf16.mxu1 %v2968_v41 }
  0xeb   : > { %1251 = vmatprep.mubr.bf16.mxu0 %v2647_v4  ;;  %1292 = vmatprep.mubr.bf16.mxu1 %v2647_v4 }
  0xed   : > { %1222 = vmatpush1.bf16.msra.mxu0 %v2970_v42  ;;  %1263 = vmatpush1.bf16.msra.mxu1 %v2972_v43 }
  0xee   : > { %1223 = vmatprep.subr.bf16.mxu0 %v2976_v44  ;;  %1264 = vmatprep.subr.bf16.mxu1 %v2980_v45 }
  0xf1   : > { %1224 = vmatpush1.bf16.msra.mxu0 %v2982_v46  ;;  %1265 = vmatpush1.bf16.msra.mxu1 %v2990_v48 }
  0xf2   : > { %1225 = vmatprep.subr.bf16.mxu0 %v2994_v49  ;;  %1266 = vmatprep.subr.bf16.mxu1 %v2996_v50 }
  0xf5   : > { %1226 = vmatpush1.bf16.msra.mxu0 %v3000_v51  ;;  %1267 = vmatpush1.bf16.msra.mxu1 %v3002_v52 }
  0xf6   : > { %1227 = vmatprep.subr.bf16.mxu0 %v3006_v53  ;;  %1268 = vmatprep.subr.bf16.mxu1 %v3008_v54 }
  0xf9   : > { %1228 = vmatpush1.bf16.msra.mxu0 %v3014_v55  ;;  %1269 = vmatpush1.bf16.msra.mxu1 %v3016_v56 }
  0xfa   : > { %1229 = vmatprep.subr.bf16.mxu0 %v3020_v57  ;;  %1270 = vmatprep.subr.bf16.mxu1 %v3022_v58 }
  0xfd   : > { %1230 = vmatpush1.bf16.msra.mxu0 %v3026_v59  ;;  %1271 = vmatpush1.bf16.msra.mxu1 %v3028_v60 }
  0xfe   : > { %1231 = vmatprep.subr.bf16.mxu0 %v3032_v61  ;;  %1272 = vmatprep.subr.bf16.mxu1 %v3034_v62 }
 0x101   : > { %1232 = vmatpush1.bf16.msra.mxu0 %v3038_v63  ;;  %1273 = vmatpush1.bf16.msra.mxu1 %v3040_v0 }
 0x102   : > { %1233 = vmatprep.subr.bf16.mxu0 %v3044_v1  ;;  %1274 = vmatprep.subr.bf16.mxu1 %v3046_v2 }
 0x105   : > { %1234 = vmatpush1.bf16.msra.mxu0 %v3050_v3  ;;  %1275 = vmatpush1.bf16.msra.mxu1 %v3052_v5 }
 0x106   : > { %1337 = vmatprep.subr.bf16.mxu0 %v2954_v35  ;;  %1378 = vmatprep.subr.bf16.mxu1 %v2956_v36 }
 0x19b   : > { %v756_v19 = vpop.f32.mrb[0].mxu0  ;;  %v809_v20 = vpop.f32.mrb[0].mxu1 }
 0x19c   : > { %v757_v21 = vadd.f32 %v756_v19, %v533_v15  ;;  %v758_v22 = vpop.f32.mrb[1].mxu0  ;;  %v810_v23 = vadd.f32 %v809_v20, %v541_v16  ;;  %v811_v24 = vpop.f32.mrb[1].mxu1 }
 0x19d   : > { %v759_v25 = vadd.f32 %v758_v22, %v537_v17  ;;  %v760_v26 = vpop.f32.mrb[2].mxu0  ;;  %v812_v27 = vadd.f32 %v811_v24, %v545_v18  ;;  %v813_v28 = vpop.f32.mrb[2].mxu1 }
 0x19e   : > { %v761_v29 = vadd.f32 %v760_v26, %v533_v15  ;;  %v762_v30 = vpop.f32.mrb[3].mxu0  ;;  %v814_v31 = vadd.f32 %v813_v28, %v541_v16  ;;  %v815_v32 = vpop.f32.mrb[3].mxu1 }
 0x19f   : > { %v2015_v33 = vpack.c.bf16 %v759_v25, %v757_v21  ;;  %v763_v34 = vadd.f32 %v762_v30, %v537_v17  ;;  %v2016_v37 = vpack.c.bf16 %v812_v27, %v810_v23  ;;  %v816_v47 = vadd.f32 %v815_v32, %v545_v18 }
 0x1a1   : > { %v3095_v6 = vpack.c.bf16 %v763_v34, %v761_v29  ;;  %v3097_v7 = vpack.c.bf16 %v816_v47, %v814_v31  ;;  %v936_v34 = vunpack.c.l.bf16 %v2015_v33  ;;  %v938_v47 = vunpack.c.l.bf16 %v2016_v37 }
 0x1a3   : > { %v766_v9 = vpop.f32.mrb[4].mxu0  ;;  %v819_v10 = vpop.f32.mrb[4].mxu1 }
 0x1a4   : > { %v767_v11 = vadd.f32 %v766_v9, %v533_v15  ;;  %v768_v12 = vpop.f32.mrb[5].mxu0  ;;  %v820_v13 = vadd.f32 %v819_v10, %v541_v16  ;;  %v821_v14 = vpop.f32.mrb[5].mxu1 }
 0x1a5   : > { %v769_v19 = vadd.f32 %v768_v12, %v537_v17  ;;  %v770_v20 = vpop.f32.mrb[6].mxu0  ;;  %v822_v22 = vadd.f32 %v821_v14, %v545_v18  ;;  %v823_v24 = vpop.f32.mrb[6].mxu1  ;;  %v937_v12 = vunpack.c.h.bf16 %v2015_v33  ;;  %v939_v14 = vunpack.c.h.bf16 %v2016_v37 }
 0x1a6   : > { %v771_v26 = vadd.f32 %v770_v20, %v533_v15  ;;  %v772_v28 = vpop.f32.mrb[7].mxu0  ;;  %v824_v21 = vadd.f32 %v823_v24, %v541_v16  ;;  %v825_v25 = vpop.f32.mrb[7].mxu1 }
 0x1a7   : > { %v3099_v23 = vpack.c.bf16 %v769_v19, %v767_v11  ;;  %v773_v27 = vadd.f32 %v772_v28, %v537_v17  ;;  %v3101_v29 = vpack.c.bf16 %v822_v22, %v820_v13  ;;  %v826_v30 = vadd.f32 %v825_v25, %v545_v18 }
 0x1a9   : > { %v3103_v31 = vpack.c.bf16 %v773_v27, %v771_v26  ;;  %v3105_v32 = vpack.c.bf16 %v826_v30, %v824_v21 }
 0x1bb   : > { %v1135_v9 = vpop.f32.mrb[8].mxu0  ;;  %v1176_v10 = vpop.f32.mrb[8].mxu1 }
 0x1bc   : > { %v1183_v15 = vadd.f32 %v1135_v9, %v936_v34  ;;  %v1185_v20 = vadd.f32 %v1176_v10, %v938_v47  ;;  %v1137_v16 = vpop.f32.mrb[9].mxu0  ;;  %v1178_v24 = vpop.f32.mrb[9].mxu1  ;;  %v933_v47 = vld [vmem:[#allocation15] sm:$0xff] }
 0x1bd   : > { %v1184_v11 = vadd.f32 %v1137_v16, %v937_v12  ;;  %v1186_v19 = vadd.f32 %v1178_v24, %v939_v14  ;;  %v1139_v17 = vpop.f32.mrb[10].mxu0  ;;  %v1180_v13 = vpop.f32.mrb[10].mxu1 }
 0x1be   : > { %v1984_v22 = vmul.f32 -1.442695, %v1183_v15  ;;  %v1140_v18 = vpop.f32.mrb[11].mxu0  ;;  %v1181_v26 = vpop.f32.mrb[11].mxu1  ;;  %v1214_v17 = vunpack.c.l.bf16 %v3095_v6  ;;  %v1216_v13 = vunpack.c.l.bf16 %v3097_v7 }
 0x1bf   : > { %v1985_v28 = vmul.f32 -1.442695, %v1184_v11  ;;  %v1986_v21 = vmul.f32 -1.442695, %v1186_v19  ;;  %v1215_v26 = vunpack.c.h.bf16 %v3095_v6 }
 0x1c0   : > { %2274 = vpow2.f32 %v1984_v22 }
 0x1c1   : > { %2276 = vpow2.f32 %v1985_v28  ;;  %v1217_v28 = vunpack.c.h.bf16 %v3097_v7 }
 0x1c2   : > { %2278 = vpow2.f32 %v1986_v21 }
 0x1c3   : > { %2280 = vtanh.f32 %v1185_v20 }
 0x1ca   : > { %v2275_v25 = vpop.eup %2274 }
 0x1cb   : > { %v2277_v27 = vpop.eup %2276  ;;  %v1190_v30 = vadd.f32 1.0, %v2275_v25 }
 0x1cc   : > { %v1196_v33 = vadd.f32 1.0, %v2277_v27  ;;  %v2279_v37 = vpop.eup %2278 }
 0x1cd   : > { %2282 = vrcp.f32 %v1190_v30  ;;  %v2281_v34 = vpop.eup %2280  ;;  %v1203_v14 = vadd.f32 1.0, %v2279_v37 }
 0x1ce   : > { %2284 = vrcp.f32 %v1196_v33 }
 0x1cf   : > { %2286 = vrcp.f32 %v1203_v14 }
 0x1d7   : > { %v2283_v9 = vpop.eup %2282 }
 0x1d8   : > { %v2285_v10 = vpop.eup %2284  ;;  %v1207_v12 = vmul.f32 %v2283_v9, %v2281_v34 }
 0x1d9   : > { %v1206_v15 = vmul.f32 %v2285_v10, %v933_v47  ;;  %v2287_v24 = vpop.eup %2286 }
 0x1db   : > { %v3107_v16 = vadd.f32 %v1207_v12, %v1206_v15 }
 0x1dd   : > { %2288 = vtanh.f32 %v3107_v16 }
 0x1e7   : > { %v2289_v11 = vpop.eup %2288 }
 0x1e8   : > { %v1210_v19 = vmul.f32 %v2289_v11, %v2287_v24 }
 0x1ea   : > { %v1218_v20 = vpack.c.bf16 %v1210_v19, %v1210_v19 }
 0x1ec   : > { %1252 = vmatmul.mubr.bf16.vlgmr.msra.gmra.mrb[12].mxu0 %v1218_v20  ;;  %1293 = vmatmul.mubr.bf16.vlgmr.msra.gmra.mrb[12].mxu1 %v1218_v20 }
 0x1ed   : > { %1338 = vmatpush1.bf16.msra.mxu0 %v2960_v38  ;;  %1379 = vmatpush1.bf16.msra.mxu1 %v2962_v39 }
 0x1ee   : > { %1339 = vmatprep.subr.bf16.mxu0 %v2964_v40  ;;  %1380 = vmatprep.subr.bf16.mxu1 %v2968_v41 }
 0x1ef   : > { %1369 = vmatprep.mubr.bf16.mxu0 %v2647_v4  ;;  %1410 = vmatprep.mubr.bf16.mxu1 %v2647_v4 }
 0x1f1   : > { %1340 = vmatpush1.bf16.msra.mxu0 %v2970_v42  ;;  %1381 = vmatpush1.bf16.msra.mxu1 %v2972_v43 }
 0x1f2   : > { %1341 = vmatprep.subr.bf16.mxu0 %v2976_v44  ;;  %1382 = vmatprep.subr.bf16.mxu1 %v2980_v45 }
 0x1f5   : > { %1342 = vmatpush1.bf16.msra.mxu0 %v2982_v46  ;;  %1383 = vmatpush1.bf16.msra.mxu1 %v2990_v48 }
 0x1f6   : > { %1343 = vmatprep.subr.bf16.mxu0 %v2994_v49  ;;  %1384 = vmatprep.subr.bf16.mxu1 %v2996_v50 }
 0x1f9   : > { %1344 = vmatpush1.bf16.msra.mxu0 %v3000_v51  ;;  %1385 = vmatpush1.bf16.msra.mxu1 %v3002_v52 }
 0x1fa   : > { %1345 = vmatprep.subr.bf16.mxu0 %v3006_v53  ;;  %1386 = vmatprep.subr.bf16.mxu1 %v3008_v54 }
 0x1fd   : > { %1346 = vmatpush1.bf16.msra.mxu0 %v3014_v55  ;;  %1387 = vmatpush1.bf16.msra.mxu1 %v3016_v56 }
 0x1fe   : > { %1347 = vmatprep.subr.bf16.mxu0 %v3020_v57  ;;  %1388 = vmatprep.subr.bf16.mxu1 %v3022_v58 }
 0x201   : > { %1348 = vmatpush1.bf16.msra.mxu0 %v3026_v59  ;;  %1389 = vmatpush1.bf16.msra.mxu1 %v3028_v60 }
 0x202   : > { %1349 = vmatprep.subr.bf16.mxu0 %v3032_v61  ;;  %1390 = vmatprep.subr.bf16.mxu1 %v3034_v62 }
 0x205   : > { %1350 = vmatpush1.bf16.msra.mxu0 %v3038_v63  ;;  %1391 = vmatpush1.bf16.msra.mxu1 %v3040_v0 }
 0x206   : > { %1351 = vmatprep.subr.bf16.mxu0 %v3044_v1  ;;  %1392 = vmatprep.subr.bf16.mxu1 %v3046_v2 }
 0x209   : > { %1352 = vmatpush1.bf16.msra.mxu0 %v3050_v3  ;;  %1393 = vmatpush1.bf16.msra.mxu1 %v3052_v5 }
 0x20a   : > { %1455 = vmatprep.subr.bf16.mxu0 %v2954_v35  ;;  %1496 = vmatprep.subr.bf16.mxu1 %v2956_v36 }
 0x2bf   : > { %v1253_v22 = vpop.f32.mrb[12].mxu0  ;;  %v1294_v18 = vpop.f32.mrb[12].mxu1 }
 0x2c0   : > { %v1301_v21 = vadd.f32 %v1253_v22, %v1214_v17  ;;  %v1303_v25 = vadd.f32 %v1294_v18, %v1216_v13  ;;  %v1255_v27 = vpop.f32.mrb[13].mxu0  ;;  %v1296_v30 = vpop.f32.mrb[13].mxu1 }
 0x2c1   : > { %v1302_v33 = vadd.f32 %v1255_v27, %v1215_v26  ;;  %v1304_v37 = vadd.f32 %v1296_v30, %v1217_v28  ;;  %v1257_v34 = vpop.f32.mrb[14].mxu0  ;;  %v1298_v35 = vpop.f32.mrb[14].mxu1  ;;  %v1450_v30 = vunpack.c.l.bf16 %v3103_v31 }
 0x2c2   : > { %v1987_v47 = vmul.f32 -1.442695, %v1301_v21  ;;  %v1258_v36 = vpop.f32.mrb[15].mxu0  ;;  %v1299_v9 = vpop.f32.mrb[15].mxu1  ;;  %v1451_v35 = vunpack.c.h.bf16 %v3103_v31 }
 0x2c3   : > { %v1988_v10 = vmul.f32 -1.442695, %v1302_v33  ;;  %v1989_v12 = vmul.f32 -1.442695, %v1304_v37  ;;  %v1452_v33 = vunpack.c.l.bf16 %v3105_v32 }
 0x2c4   : > { %2290 = vpow2.f32 %v1987_v47  ;;  %v1453_v47 = vunpack.c.h.bf16 %v3105_v32 }
 0x2c5   : > { %2292 = vpow2.f32 %v1988_v10 }
 0x2c6   : > { %2294 = vpow2.f32 %v1989_v12 }
 0x2c7   : > { %2296 = vtanh.f32 %v1303_v25 }
 0x2ce   : > { %v2291_v14 = vpop.eup %2290 }
 0x2cf   : > { %v2293_v15 = vpop.eup %2292  ;;  %v1308_v6 = vadd.f32 1.0, %v2291_v14 }
 0x2d0   : > { %v1314_v7 = vadd.f32 1.0, %v2293_v15  ;;  %v2295_v24 = vpop.eup %2294 }
 0x2d1   : > { %2298 = vrcp.f32 %v1308_v6  ;;  %v2297_v11 = vpop.eup %2296  ;;  %v1321_v13 = vadd.f32 1.0, %v2295_v24 }
 0x2d2   : > { %2300 = vrcp.f32 %v1314_v7 }
 0x2d3   : > { %2302 = vrcp.f32 %v1321_v13 }
 0x2db   : > { %v2299_v19 = vpop.eup %2298 }
 0x2dc   : > { %v2301_v20 = vpop.eup %2300  ;;  %v1325_v17 = vmul.f32 %v2299_v19, %v2297_v11 }
 0x2dd   : > { %v1324_v22 = vmul.f32 %v2301_v20, %v3107_v16  ;;  %v2303_v26 = vpop.eup %2302 }
 0x2df   : > { %v3149_v18 = vadd.f32 %v1325_v17, %v1324_v22 }
 0x2e1   : > { %2304 = vtanh.f32 %v3149_v18 }
 0x2eb   : > { %v2305_v28 = vpop.eup %2304 }
 0x2ec   : > { %v1328_v21 = vmul.f32 %v2305_v28, %v2303_v26 }
 0x2ee   : > { %v1336_v25 = vpack.c.bf16 %v1328_v21, %v1328_v21 }
 0x2f0   : > { %1370 = vmatmul.mubr.bf16.vlgmr.msra.gmra.mrb[16].mxu0 %v1336_v25  ;;  %1411 = vmatmul.mubr.bf16.vlgmr.msra.gmra.mrb[16].mxu1 %v1336_v25 }
 0x2f1   : > { %1456 = vmatpush1.bf16.msra.mxu0 %v2960_v38  ;;  %1497 = vmatpush1.bf16.msra.mxu1 %v2962_v39  ;;  %v1334_v38 = vunpack.c.l.bf16 %v3101_v29 }
 0x2f2   : > { %1457 = vmatprep.subr.bf16.mxu0 %v2964_v40  ;;  %1498 = vmatprep.subr.bf16.mxu1 %v2968_v41  ;;  %v1333_v41 = vunpack.c.h.bf16 %v3099_v23 }
 0x2f3   : > { %1487 = vmatprep.mubr.bf16.mxu0 %v2647_v4  ;;  %1528 = vmatprep.mubr.bf16.mxu1 %v2647_v4  ;;  %v1332_v4 = vunpack.c.l.bf16 %v3099_v23 }
 0x2f5   : > { %1458 = vmatpush1.bf16.msra.mxu0 %v2970_v42  ;;  %1499 = vmatpush1.bf16.msra.mxu1 %v2972_v43  ;;  %v1335_v42 = vunpack.c.h.bf16 %v3101_v29 }
 0x2f6   : > { %1459 = vmatprep.subr.bf16.mxu0 %v2976_v44  ;;  %1500 = vmatprep.subr.bf16.mxu1 %v2980_v45 }
 0x2f9   : > { %1460 = vmatpush1.bf16.msra.mxu0 %v2982_v46  ;;  %1501 = vmatpush1.bf16.msra.mxu1 %v2990_v48 }
 0x2fa   : > { %1461 = vmatprep.subr.bf16.mxu0 %v2994_v49  ;;  %1502 = vmatprep.subr.bf16.mxu1 %v2996_v50 }
 0x2fd   : > { %1462 = vmatpush1.bf16.msra.mxu0 %v3000_v51  ;;  %1503 = vmatpush1.bf16.msra.mxu1 %v3002_v52 }
 0x2fe   : > { %1463 = vmatprep.subr.bf16.mxu0 %v3006_v53  ;;  %1504 = vmatprep.subr.bf16.mxu1 %v3008_v54 }
 0x301   : > { %1464 = vmatpush1.bf16.msra.mxu0 %v3014_v55  ;;  %1505 = vmatpush1.bf16.msra.mxu1 %v3016_v56 }
 0x302   : > { %1465 = vmatprep.subr.bf16.mxu0 %v3020_v57  ;;  %1506 = vmatprep.subr.bf16.mxu1 %v3022_v58 }
 0x305   : > { %1466 = vmatpush1.bf16.msra.mxu0 %v3026_v59  ;;  %1507 = vmatpush1.bf16.msra.mxu1 %v3028_v60 }
 0x306   : > { %1467 = vmatprep.subr.bf16.mxu0 %v3032_v61  ;;  %1508 = vmatprep.subr.bf16.mxu1 %v3034_v62 }
 0x309   : > { %1468 = vmatpush1.bf16.msra.mxu0 %v3038_v63  ;;  %1509 = vmatpush1.bf16.msra.mxu1 %v3040_v0 }
 0x30a   : > { %1469 = vmatprep.subr.bf16.mxu0 %v3044_v1  ;;  %1510 = vmatprep.subr.bf16.mxu1 %v3046_v2 }
 0x30d   : > { %1470 = vmatpush1.bf16.msra.mxu0 %v3050_v3  ;;  %1511 = vmatpush1.bf16.msra.mxu1 %v3052_v5 }
 0x3c3   : > { %v1371_v39 = vpop.f32.mrb[16].mxu0  ;;  %v1412_v40 = vpop.f32.mrb[16].mxu1 }
 0x3c4   : > { %v1419_v43 = vadd.f32 %v1371_v39, %v1332_v4  ;;  %v1421_v44 = vadd.f32 %v1412_v40, %v1334_v38  ;;  %v1373_v45 = vpop.f32.mrb[17].mxu0  ;;  %v1414_v46 = vpop.f32.mrb[17].mxu1 }
 0x3c5   : > { %v1420_v48 = vadd.f32 %v1373_v45, %v1333_v41  ;;  %v1422_v49 = vadd.f32 %v1414_v46, %v1335_v42  ;;  %v1375_v50 = vpop.f32.mrb[18].mxu0  ;;  %v1416_v51 = vpop.f32.mrb[18].mxu1  ;;  %v2339_v45 = vld [vmem:[#allocation11 + $0x8] sm:$0xff] (!%p1996_p9)   ;;  %v2340_v46 = vld [vmem:[#allocation11 + $0x10] sm:$0xff] (!%p1996_p9)  }
 0x3c6   : > { %v1990_v52 = vmul.f32 -1.442695, %v1419_v43  ;;  %v1376_v53 = vpop.f32.mrb[19].mxu0  ;;  %v1417_v54 = vpop.f32.mrb[19].mxu1  ;;  %v2338_v43 = vld [vmem:[#allocation11] sm:$0xff] (!%p1996_p9)   ;;  %v2343_v50 = vld [vmem:[#allocation11 + $0x28] sm:$0xff] (!%p1996_p9)  }
 0x3c7   : > { %v1991_v55 = vmul.f32 -1.442695, %v1420_v48  ;;  %v1992_v56 = vmul.f32 -1.442695, %v1422_v49  ;;  %v2341_v48 = vld [vmem:[#allocation11 + $0x18] sm:$0xff] (!%p1996_p9)   ;;  %v2342_v49 = vld [vmem:[#allocation11 + $0x20] sm:$0xff] (!%p1996_p9)  }
 0x3c8   : > { %2306 = vpow2.f32 %v1990_v52  ;;  %v2344_v51 = vld [vmem:[#allocation11 + $0x30] sm:$0xff] (!%p1996_p9)   ;;  %v2345_v52 = vld [vmem:[#allocation11 + $0x38] sm:$0xff] (!%p1996_p9)  }
 0x3c9   : > { %2308 = vpow2.f32 %v1991_v55  ;;  %v1685_v55 = vand.u32 (!%p1996_p9), 127, %v530_v8 }
 0x3ca   : > { %2310 = vpow2.f32 %v1992_v56  ;;  %v1997_v56 = vld [vmem:[%s3316_s30] ss:$0 sm:$0xff] (!%p1996_p9) }
 0x3cb   : > { %2312 = vtanh.f32 %v1421_v44  ;;  %v2648_v44 = vmov (!%p1996_p9), 0.0   ;;  %vm1686_vm1 = vcmp.lt.s32.totalorder (!%p1996_p9), %v1685_v55, 16 }
 0x3cc   : > { %2032 = vmatprep.subr.bf16.mxu0 (!%p1996_p9), %v2648_v44 }
 0x3d2   : > { %v2307_v57 = vpop.eup %2306 }
 0x3d3   : > { %v2309_v58 = vpop.eup %2308  ;;  %v1426_v59 = vadd.f32 1.0, %v2307_v57 }
 0x3d4   : > { %v1432_v60 = vadd.f32 1.0, %v2309_v58  ;;  %v2311_v61 = vpop.eup %2310 }
 0x3d5   : > { %2314 = vrcp.f32 %v1426_v59  ;;  %v2313_v62 = vpop.eup %2312  ;;  %v1439_v2 = vadd.f32 1.0, %v2311_v61 }
 0x3d6   : > { %2316 = vrcp.f32 %v1432_v60 }
 0x3d7   : > { %2318 = vrcp.f32 %v1439_v2 }
 0x3df   : > { %v2315_v63 = vpop.eup %2314 }
 0x3e0   : > { %v2317_v0 = vpop.eup %2316  ;;  %v1443_v1 = vmul.f32 %v2315_v63, %v2313_v62 }
 0x3e1   : > { %v1442_v3 = vmul.f32 %v2317_v0, %v3149_v18  ;;  %v2319_v23 = vpop.eup %2318 }
 0x3e3   : > { %v1444_v5 = vadd.f32 %v1443_v1, %v1442_v3 }
 0x3e5   : > { %2320 = vtanh.f32 %v1444_v5 }
 0x3ef   : > { %v2321_v29 = vpop.eup %2320 }
 0x3f0   : > { %v1446_v16 = vmul.f32 %v2321_v29, %v2319_v23 }
 0x3f2   : > { %v1454_v27 = vpack.c.bf16 %v1446_v16, %v1446_v16 }
 0x3f4   : > { %1488 = vmatmul.mubr.bf16.vlgmr.msra.gmra.mrb[20].mxu0 %v1454_v27  ;;  %1529 = vmatmul.mubr.bf16.vlgmr.msra.gmra.mrb[20].mxu1 %v1454_v27 }
 0x3f5   : > { %2033 = vmatpush3.bf16.msra.mxu0 (!%p1996_p9), %v2338_v43  ;;  %2048 = vmatprep.mubr.msk.bf16.mxu0 (!%p1996_p9), %vm2649_vm0, %v2648_v44 }
 0x3f6   : > { %2034 = vmatprep.subr.bf16.mxu0 (!%p1996_p9), %v2648_v44 }
 0x3f9   : > { %2035 = vmatpush3.bf16.msra.mxu0 (!%p1996_p9), %v2339_v45 }
 0x3fa   : > { %2036 = vmatprep.subr.bf16.mxu0 (!%p1996_p9), %v2648_v44 }
 0x3fd   : > { %2037 = vmatpush3.bf16.msra.mxu0 (!%p1996_p9), %v2340_v46 }
 0x3fe   : > { %2038 = vmatprep.subr.bf16.mxu0 (!%p1996_p9), %v2648_v44 }
 0x401   : > { %2039 = vmatpush3.bf16.msra.mxu0 (!%p1996_p9), %v2341_v48 }
 0x402   : > { %2040 = vmatprep.subr.bf16.mxu0 (!%p1996_p9), %v2648_v44 }
 0x405   : > { %2041 = vmatpush3.bf16.msra.mxu0 (!%p1996_p9), %v2342_v49 }
 0x406   : > { %2042 = vmatprep.subr.bf16.mxu0 (!%p1996_p9), %v2648_v44 }
 0x409   : > { %2043 = vmatpush3.bf16.msra.mxu0 (!%p1996_p9), %v2343_v50 }
 0x40a   : > { %2044 = vmatprep.subr.bf16.mxu0 (!%p1996_p9), %v2648_v44 }
 0x40d   : > { %2045 = vmatpush3.bf16.msra.mxu0 (!%p1996_p9), %v2344_v51 }
 0x40e   : > { %2046 = vmatprep.subr.bf16.mxu0 (!%p1996_p9), %v2648_v44 }
 0x411   : > { %2047 = vmatpush3.bf16.msra.mxu0 (!%p1996_p9), %v2345_v52 }
 0x4c7   : > { %v1489_v37 = vpop.f32.mrb[20].mxu0  ;;  %v1530_v34 = vpop.f32.mrb[20].mxu1 }
 0x4c8   : > { %v1537_v36 = vadd.f32 %v1489_v37, %v1450_v30  ;;  %v1539_v9 = vadd.f32 %v1530_v34, %v1452_v33  ;;  %v1491_v10 = vpop.f32.mrb[21].mxu0  ;;  %v1532_v12 = vpop.f32.mrb[21].mxu1 }
 0x4c9   : > { %v1538_v14 = vadd.f32 %v1491_v10, %v1451_v35  ;;  %v1540_v15 = vadd.f32 %v1532_v12, %v1453_v47  ;;  %v1493_v6 = vpop.f32.mrb[22].mxu0  ;;  %v1534_v7 = vpop.f32.mrb[22].mxu1 }
 0x4ca   : > { %v1993_v24 = vmul.f32 -1.442695, %v1537_v36  ;;  %v1494_v11 = vpop.f32.mrb[23].mxu0  ;;  %v1535_v19 = vpop.f32.mrb[23].mxu1 }
 0x4cb   : > { %v1994_v20 = vmul.f32 -1.442695, %v1538_v14  ;;  %v1995_v17 = vmul.f32 -1.442695, %v1540_v15 }
 0x4cc   : > { %2322 = vpow2.f32 %v1993_v24 }
 0x4cd   : > { %2324 = vpow2.f32 %v1994_v20 }
 0x4ce   : > { %2326 = vpow2.f32 %v1995_v17 }
 0x4cf   : > { %2328 = vtanh.f32 %v1539_v9 }
 0x4d6   : > { %v2323_v13 = vpop.eup %2322 }
 0x4d7   : > { %v2325_v22 = vpop.eup %2324  ;;  %v1544_v31 = vadd.f32 1.0, %v2323_v13 }
 0x4d8   : > { %v1550_v32 = vadd.f32 1.0, %v2325_v22  ;;  %v2327_v18 = vpop.eup %2326 }
 0x4d9   : > { %2330 = vrcp.f32 %v1544_v31  ;;  %v2329_v26 = vpop.eup %2328  ;;  %v1557_v4 = vadd.f32 1.0, %v2327_v18 }
 0x4da   : > { %2332 = vrcp.f32 %v1550_v32 }
 0x4db   : > { %2334 = vrcp.f32 %v1557_v4 }
 0x4e3   : > { %v2331_v28 = vpop.eup %2330 }
 0x4e4   : > { %v2333_v21 = vpop.eup %2332  ;;  %v1561_v25 = vmul.f32 %v2331_v28, %v2329_v26 }
 0x4e5   : > { %v1560_v38 = vmul.f32 %v2333_v21, %v1444_v5  ;;  %v2335_v40 = vpop.eup %2334 }
 0x4e7   : > { %v1562_v39 = vadd.f32 %v1561_v25, %v1560_v38 }
 0x4e9   : > { %2336 = vtanh.f32 %v1562_v39  ;;  %1566 = vst [vmem:[#allocation15] sm:$0xff] %v1562_v39 }
 0x4f0   : > { %1570 = sbr.rel (%p1996_p9) target bundleno = 1812 (0x714), region = 80 }
 0x4f3   : > { %v2337_v41 = vpop.eup %2336 }
 0x4f4   : > { %v1564_v42 = vmul.f32 %v2337_v41, %v2335_v40 }
 0x4f6   : > { %1565 = vst [vmem:[#allocation13] sm:$0xff] %v1564_v42 }
 0x4fd   : > { %v1571_v53 = vld [vmem:[#allocation13] sm:$0xff] }
 0x4fe   : > { %v1572_v54 = vpack.c.bf16 %v1571_v53, %v1571_v53 }
 0x500   : > { %2049 = vmatmul.mubr.bf16.vlgmr.msra.gmra.mrb[0].mxu0 %v1572_v54 }
 0x5d3   : > { %v1678_v57 = vpop.f32.mrb[0].mxu0 }
 0x5d4   : > { %v1679_v58 = vadd.f32 %v1997_v56, %v1678_v57  ;;  %v2050_v59 = vpop.f32.mrb[1].mxu0 }
 0x5d5   : > { %v1681_v60 = vpop.f32.mrb[2].mxu0 }
 0x5d6   : > { %v2051_v61 = vpop.f32.mrb[3].mxu0  ;;  %v1687_v62 = vsel %vm1686_vm1, %v1679_v58, -1e+30 }
 0x5d7   : > { %1688 = vmax.xlane.f32.xlu0 %v1687_v62 }
 0x664   : > { %v1689_v63 = vpop.xlane.xlu0 %1688 }
 0x665   : > { %v1690_v0 = vsub.f32 %v1687_v62, %v1689_v63 }
 0x667   : > { %v1691_v1 = vmul.f32 1.442695, %v1690_v0 }
 0x669   : > { %2346 = vpow2.f32 %v1691_v1 }
 0x673   : > { %v2347_v2 = vpop.eup %2346 }
 0x674   : > { %1693 = vadd.xlane.f32.xlu0 %v2347_v2 }
 0x701   : > { %v1694_v3 = vpop.xlane.xlu0 %1693 }
 0x702   : > { %2348 = vlog2.f32 %v1694_v3 }
 0x70c   : > { %v2349_v8 = vpop.eup %2348 }
 0x70d   : > { %v1696_v5 = vmul.f32 0.6931472, %v2349_v8 }
 0x70f   : > { %v1697_v23 = vadd.f32 %v1696_v5, %v1689_v63 }
 0x711   : > { %v1698_v29 = vsub.f32 %v1687_v62, %v1697_v23 }
 0x713   : > { %1699 = vst [vmem:[#allocation12] sm:$0xff] %v1698_v29 }
 0x714 PF: > { %s3317_s29 = sadd.s32 4294967295, %s2636_s18   ;;  %s2650_s27 = smov [#allocation13]  }
 0x715   : > { %p3200_p4 = scmp.eq.s32.totalorder %s3317_s29, 1  ;;  %s1722_s10 = sshll.u32 %s2650_s27, 4  ;;  %s1723_s10 = int_to_ptr.vmem [resolvable:$true] %s1722_s10 }
 0x716   : > { %s2492_s24 = scalar_lea.vmem %s1723_s10, 128  ;;  %p2499_p0 = scmp.lt.s32.totalorder %s1723_s10, %s1723_s10 }
 0x717   : > { %p2493_p5 = scmp.ne.s32.totalorder %s1723_s10, %s2492_s24  ;;  %p2500_p2 = scmp.lt.s32.totalorder %s2492_s24, %s2492_s24 }
 0x719   : > { %p2494_p12 = pnand %p2493_p5, %p3200_p4  ;;  %p2501_p6 = por %p2500_p2, %p2499_p0 }
 0x71b   : > { %p2495_p13 = pneg %p2494_p12 }
 0x71d   : > { %p2502_p10 = pnand %p2501_p6, %p2495_p13 }
 0x71f   : > { %2505 = shalt.err (!%p2502_p10)
}
 0x720   : > { %s3319_s8 = sld [smem:[#allocation23_spill]] }
 0x726   : > { %s2506_s23 = scalar_lea.hbm %s3319_s8, 128 }
 0x727   : > { %p2507_p1 = scmp.ne.s32.totalorder %s3319_s8, %s2506_s23  ;;  %p2512_p11 = scmp.lt.u32.totalorder %s2506_s23, %s3319_s8 }
 0x729   : > { %p2508_p3 = pnand %p2507_p1, %p3200_p4 }
 0x72b   : > { %p2509_p8 = pneg %p2508_p3 }
 0x72d   : > { %p2514_p7 = pnand %p2512_p11, %p2509_p8 }
 0x72f   : > { %2517 = shalt.err (!%p2514_p7)
}
 0x730   : > { %2073 = dma.vmem_to_hbm [thread:$0]  (%p3200_p4), %s1723_s10, 128, %s3319_s8, [#allocation14]  }
 0x731   : > { %s2651_s16 = smov [#allocation12]   ;;  %s2652_s30 = smov [#allocation15]  }
 0x732   : > { %s1709_s20 = sshll.u32 %s2651_s16, 4  ;;  %s1735_s29 = sshll.u32 %s2652_s30, 4  ;;  %s1710_s20 = int_to_ptr.vmem [resolvable:$true] %s1709_s20  ;;  %s1736_s29 = int_to_ptr.vmem [resolvable:$true] %s1735_s29 }
 0x733   : > { %s2518_s27 = scalar_lea.vmem %s1710_s20, 128  ;;  %p2525_p13 = scmp.lt.s32.totalorder %s1710_s20, %s1710_s20 }
 0x734   : > { %p2519_p9 = scmp.ne.s32.totalorder %s1710_s20, %s2518_s27  ;;  %p2526_p0 = scmp.lt.s32.totalorder %s2518_s27, %s2518_s27 }
 0x736   : > { %p2520_p5 = pnand %p2519_p9, %p3200_p4  ;;  %p2527_p2 = por %p2526_p0, %p2525_p13 }
 0x738   : > { %p2521_p12 = pneg %p2520_p5 }
 0x73a   : > { %p2528_p6 = pnand %p2527_p2, %p2521_p12 }
 0x73c   : > { %2531 = shalt.err (!%p2528_p6)
}
 0x73d   : > { %s3320_s13 = sld [smem:[#allocation22_spill]] }
 0x743   : > { %s3321_s23 = smov %s3320_s13  ;;  %s2532_s10 = scalar_lea.hbm %s3320_s13, 128 }
 0x744   : > { %p2533_p10 = scmp.ne.s32.totalorder %s3321_s23, %s2532_s10  ;;  %p2538_p8 = scmp.lt.u32.totalorder %s2532_s10, %s3321_s23 }
 0x746   : > { %p2534_p1 = pnand %p2533_p10, %p3200_p4 }
 0x748   : > { %p2535_p3 = pneg %p2534_p1 }
 0x74a   : > { %p2540_p11 = pnand %p2538_p8, %p2535_p3 }
 0x74c   : > { %2543 = shalt.err (!%p2540_p11)
}
 0x74d   : > { %2071 = dma.vmem_to_hbm [thread:$0]  (%p3200_p4), %s1710_s20, 128, %s3321_s23, [#allocation5]  }
 0x74e   : > { %s2544_s16 = scalar_lea.vmem %s1736_s29, 128  ;;  %p2551_p12 = scmp.lt.s32.totalorder %s1736_s29, %s1736_s29 }
 0x74f   : > { %p2545_p7 = scmp.ne.s32.totalorder %s1736_s29, %s2544_s16  ;;  %p2552_p13 = scmp.lt.s32.totalorder %s2544_s16, %s2544_s16 }
 0x751   : > { %p2546_p9 = pnand %p2545_p7, %p3200_p4  ;;  %p2553_p0 = por %p2552_p13, %p2551_p12 }
 0x753   : > { %p2547_p5 = pneg %p2546_p9 }
 0x755   : > { %p2554_p2 = pnand %p2553_p0, %p2547_p5 }
 0x757   : > { %2557 = shalt.err (!%p2554_p2)
}
 0x758   : > { %s3322_s24 = sld [smem:[#allocation24_spill]] }
 0x75e   : > { %s2558_s25 = scalar_lea.hbm %s3322_s24, 128 }
 0x75f   : > { %p2559_p6 = scmp.ne.s32.totalorder %s3322_s24, %s2558_s25  ;;  %p2564_p3 = scmp.lt.u32.totalorder %s2558_s25, %s3322_s24 }
 0x761   : > { %p2560_p10 = pnand %p2559_p6, %p3200_p4 }
 0x763   : > { %p2561_p1 = pneg %p2560_p10 }
 0x765   : > { %p2566_p8 = pnand %p2564_p3, %p2561_p1 }
 0x767   : > { %2569 = shalt.err (!%p2566_p8)
}
 0x768   : > { %2075 = dma.vmem_to_hbm [thread:$0]  (%p3200_p4), %s1736_s29, 128, %s3322_s24, [#allocation14]  }
 0x769   : > { %2607 = dma.done.wait (%p3200_p4), [#allocation5], 128  }
 0x76a   : > { %2609 = vsyncadd (%p3200_p4), [#allocation5], 4294967168 }
 0x76b   : > { %2611 = dma.done.wait (%p3200_p4), [#allocation14], 256  }
 0x76c   : > { %2613 = vsyncadd (%p3200_p4), [#allocation14], 4294967040 }
 0x76d PF: > { %s28_s18 = sadd.s32 1, %s2636_s18   ;;  %s3323_s13 = smov %s2620_s14 }
 0x76e   : > { %p25_p11 = scmp.ge.s32.totalorder %s28_s18, 4   ;;  %s3324_s14 = smov %s2624_s15 }
 0x76f   : > { %s3325_s15 = smov %s2881_s26  ;;  %s3326_s16 = smov %s2632_s17 }
 0x770   : > { %s3327_s17 = smov %s3329_s5  ;;  %27 = sbr.rel (!%p25_p11) target bundleno = 13 (0xd), region = 141 }
 0x777   :  { %1756 = vsyncpa [#allocation4], 1 }
 0x778   :  { %1758 = vsyncpa [#allocation4 + $0x1], 1 }
 0x779   :  { %1759 = vsyncpa [#allocation7], 1 }
 0x77a   :  { %1760 = vsyncpa [#allocation10], 1 }
 0x77b   :  { %1761 = vsyncpa [#allocation5], 1 }
 0x77c   :  { %1763 = vsyncpa [#allocation5 + $0x1], 1 }
 0x77d   :  { %1764 = vsyncpa [#allocation14], 1 }

</bundles_post_ra>
